<compile_context>
chip_gen: v6e
topology: v6e:2x2x1
jax: 0.10.0
libtpu: 0.0.40
codegen_flags: <defaults>
</compile_context>

<pallas_src>
import jax
import jax.numpy as jnp
from jax.experimental import pallas as pl
from jax.experimental.pallas import tpu as pltpu


# -----------------------------------------------------------------------------
# helpers: padding to (8, 128)-aligned shapes
# -----------------------------------------------------------------------------
def _round_up(n, m):
    return ((n + m - 1) // m) * m


def _pad2d(x, rows, cols):
    return jnp.pad(x, ((0, rows - x.shape[0]), (0, cols - x.shape[1])))


def _pad_gate_cols(w, H, Hp):
    """(rows, 4H) -> (rows, 4*Hp): each gate (i, f, g, o) in its own Hp-wide slab."""
    return jnp.concatenate(
        [jnp.pad(w[:, g * H:(g + 1) * H], ((0, 0), (0, Hp - H))) for g in range(4)],
        axis=1)


def _pick_row_tile(n):
    for tm in (512, 256, 128, 64, 32, 16, 8):
        if n % tm == 0:
            return tm
    return n


# -----------------------------------------------------------------------------
# Kernel 1: full decoder recurrence (T timesteps, single-layer LSTM + attention).
# Rows are (t, b)-major: row index = t * Bp + b.
# -----------------------------------------------------------------------------
def _make_decoder_loop_kernel(s_valid):
    def kernel(xs_ref, h0_ref, c0_ref, xenc_ref,
               wx_ref, wrec_ref, b_ref, watt_ref, batt_ref, wo_ref, bo_ref,
               outs_ref, xg_ref):
        Bp, Hp = h0_ref.shape
        Sp = xenc_ref.shape[1]
        T = xs_ref.shape[0] // Bp

        # --- hoisted input projection: one MXU matmul for all T timesteps ----
        # (removes one dependent matmul from the serial per-step chain and turns
        #  T tiny matmuls into one big MXU-efficient one; bias folded in here)
        xg_ref[...] = (jnp.dot(xs_ref[...], wx_ref[...],
                               preferred_element_type=jnp.float32)
                       + b_ref[...])                       # (T*Bp, 4*Hp)

        # Loop-invariant operands, loaded once (they live in VMEM-backed values).
        w_rec = wrec_ref[...]                              # (2*Hp, 4*Hp) = [W_prev ; W_hh]
        watt, batt = watt_ref[...], batt_ref[...]
        wo, bo = wo_ref[...], bo_ref[...]
        x_enc = xenc_ref[...]                              # (Bp, Sp, Hp)

        # Mask for source positions that exist only because of padding S -> Sp.
        smask = jax.lax.broadcasted_iota(jnp.int32, (Bp, 1, Sp), 2) < s_valid

        def step(t, carry):
            h, c, prev = carry
            row0 = pl.multiple_of(t * Bp, Bp)

            # LSTM cell: precomputed input projection + one fused recurrent matmul.
            g = (xg_ref[pl.ds(row0, Bp), :]
                 + jnp.dot(jnp.concatenate([prev, h], axis=-1), w_rec,
                           preferred_element_type=jnp.float32))        # (Bp, 4*Hp)
            i_g = jax.nn.sigmoid(g[:, 0 * Hp:1 * Hp])
            f_g = jax.nn.sigmoid(g[:, 1 * Hp:2 * Hp])
            g_g = jnp.tanh(g[:, 2 * Hp:3 * Hp])
            o_g = jax.nn.sigmoid(g[:, 3 * Hp:4 * Hp])
            c_n = f_g * c + i_g * g_g
            h_n = o_g * jnp.tanh(c_n)                                  # z_t (Bp, Hp)

            # Attention: score = Linear(z) . x_enc^T ; softmax over source positions.
            lz3 = (jnp.dot(h_n, watt, preferred_element_type=jnp.float32)
                   + batt)[:, None, :]                                 # (Bp, 1, Hp)
            score = jnp.einsum('bqh,bsh->bqs', lz3, x_enc,
                               preferred_element_type=jnp.float32)     # (Bp, 1, Sp)
            score = jnp.where(smask, score, -1e30)
            m = jnp.max(score, axis=-1, keepdims=True)
            e = jnp.exp(score - m)
            w = e * pl.reciprocal(jnp.sum(e, axis=-1, keepdims=True), approx=True)
            ctx = jnp.einsum('bqs,bsh->bqh', w, x_enc,
                             preferred_element_type=jnp.float32)[:, 0, :]  # (Bp, Hp)

            # out = tanh(Linear(concat([z, ctx]))) with a single fused matmul.
            out = jnp.tanh(jnp.dot(jnp.concatenate([h_n, ctx], axis=-1), wo,
                                   preferred_element_type=jnp.float32) + bo)
            outs_ref[pl.ds(row0, Bp), :] = out
            return (h_n, c_n, out)

        h0 = h0_ref[...]
        jax.lax.fori_loop(0, T, step, (h0, c0_ref[...], jnp.zeros_like(h0)))

    return kernel


# -----------------------------------------------------------------------------
# Kernel 2: Generator = Linear(H -> V) + LogSoftmax(dim=-1), tiled over rows.
# -----------------------------------------------------------------------------
def _make_generator_kernel(v_valid):
    def kernel(x_ref, wg_ref, bg_ref, y_ref):
        logits = (jnp.dot(x_ref[...], wg_ref[...],
                          preferred_element_type=jnp.float32) + bg_ref[...])
        col = jax.lax.broadcasted_iota(jnp.int32, logits.shape, 1)
        logits = jnp.where(col < v_valid, logits, -1e30)   # kill padded vocab lanes
        m = jnp.max(logits, axis=-1, keepdims=True)
        shifted = logits - m
        lse = jnp.log(jnp.sum(jnp.exp(shifted), axis=-1, keepdims=True))
        y_ref[...] = shifted - lse
    return kernel


# -----------------------------------------------------------------------------
# Wrapper
# -----------------------------------------------------------------------------
def decoder_forward(x_tok, h_enc, x_enc, params):
    """x_tok: (B, T) int32 token ids; h_enc: (h0, c0) each (1, B, H); x_enc: (B, S, H)."""
    B, T = x_tok.shape
    E = params['emb'].shape[1]
    H = params['whh'].shape[0]
    V = params['wg'].shape[1]
    S = x_enc.shape[1]

    Bp = _round_up(B, 8)
    Ep = _round_up(E, 128)
    Hp = _round_up(H, 128)
    Sp = _round_up(S, 8)
    Vp = _round_up(V, 128)
    f32 = jnp.float32

    # --- glue: embedding gather + time-major layout + (8,128)-aligned padding ---
    xs = params['emb'][x_tok].astype(f32)                       # (B, T, E)
    xs_tm = jnp.transpose(xs, (1, 0, 2))                        # (T, B, E)
    xs_rows = jnp.pad(xs_tm, ((0, 0), (0, Bp - B), (0, Ep - E))
                      ).reshape(T * Bp, Ep)                     # (T*Bp, Ep)

    h0 = _pad2d(h_enc[0][0].astype(f32), Bp, Hp)                # (Bp, Hp)
    c0 = _pad2d(h_enc[1][0].astype(f32), Bp, Hp)
    xenc_p = jnp.pad(x_enc.astype(f32),
                     ((0, Bp - B), (0, Sp - S), (0, Hp - H)))   # (Bp, Sp, Hp)

    # --- weights: per-gate slab padding; fuse the two recurrent matmuls --------
    wx_p = jnp.pad(_pad_gate_cols(params['wx'].astype(f32), H, Hp),
                   ((0, Ep - E), (0, 0)))                       # (Ep, 4Hp)
    w_rec = jnp.zeros((2 * Hp, 4 * Hp), f32)
    w_rec = w_rec.at[0:H].set(_pad_gate_cols(params['wp'].astype(f32), H, Hp))
    w_rec = w_rec.at[Hp:Hp + H].set(_pad_gate_cols(params['whh'].astype(f32), H, Hp))
    b_p = _pad_gate_cols(params['b_lstm'].astype(f32), H, Hp)   # (1, 4Hp)

    watt_p = _pad2d(params['watt'].astype(f32), Hp, Hp)
    batt_p = _pad2d(params['batt'].astype(f32), 1, Hp)

    wo = jnp.zeros((2 * Hp, Hp), f32)
    wo = wo.at[0:H, 0:H].set(params['woz'].astype(f32))
    wo = wo.at[Hp:Hp + H, 0:H].set(params['woc'].astype(f32))
    bo_p = _pad2d(params['bo'].astype(f32), 1, Hp)

    wg_p = _pad2d(params['wg'].astype(f32), Hp, Vp)
    bg_p = _pad2d(params['bg'].astype(f32), 1, Vp)

    # --- kernel 1: sequential recurrence (whole problem resident in VMEM) ------
    loop_inputs = (xs_rows, h0, c0, xenc_p,
                   wx_p, w_rec, b_p, watt_p, batt_p, wo, bo_p)
    outs = pl.pallas_call(
        _make_decoder_loop_kernel(S),
        out_shape=jax.ShapeDtypeStruct((T * Bp, Hp), f32),
        in_specs=[pl.BlockSpec(memory_space=pltpu.MemorySpace.VMEM)] * len(loop_inputs),
        out_specs=pl.BlockSpec(memory_space=pltpu.MemorySpace.VMEM),
        scratch_shapes=[pltpu.VMEM((T * Bp, 4 * Hp), f32)],     # hoisted input proj
    )(*loop_inputs)                                             # (T*Bp, Hp)

    # --- kernel 2: generator on the same (t, b)-major rows (no transpose) ------
    n_rows = T * Bp
    tm = _pick_row_tile(n_rows)
    y_rows = pl.pallas_call(
        _make_generator_kernel(V),
        out_shape=jax.ShapeDtypeStruct((n_rows, Vp), f32),
        grid=(n_rows // tm,),
        in_specs=[pl.BlockSpec((tm, Hp), lambda i: (i, 0)),
                  pl.BlockSpec((Hp, Vp), lambda i: (0, 0)),     # weight resident
                  pl.BlockSpec((1, Vp), lambda i: (0, 0))],
        out_specs=pl.BlockSpec((tm, Vp), lambda i: (i, 0)),
        compiler_params=pltpu.CompilerParams(
            dimension_semantics=("parallel",)),
    )(outs, wg_p, bg_p)                                         # (T*Bp, Vp)

    y = y_rows.reshape(T, Bp, Vp)[:, :B, :V]
    return jnp.transpose(y, (1, 0, 2))                          # (B, T, V)


# -----------------------------------------------------------------------------
# Pure-JAX reference (mirrors the PyTorch forward) for a correctness check.
# -----------------------------------------------------------------------------
def decoder_forward_ref(x_tok, h_enc, x_enc, params):
    B, T = x_tok.shape
    H = params['whh'].shape[0]
    xs = params['emb'][x_tok]
    h = h_enc[0][0]
    c = h_enc[1][0]
    prev = jnp.zeros((B, H), jnp.float32)
    outs = []
    for t in range(T):
        x_t = xs[:, t, :]
        gates = (x_t @ params['wx'] + prev @ params['wp'] + h @ params['whh']
                 + params['b_lstm'])
        i_g = jax.nn.sigmoid(gates[:, 0 * H:1 * H])
        f_g = jax.nn.sigmoid(gates[:, 1 * H:2 * H])
        g_g = jnp.tanh(gates[:, 2 * H:3 * H])
        o_g = jax.nn.sigmoid(gates[:, 3 * H:4 * H])
        c = f_g * c + i_g * g_g
        h = o_g * jnp.tanh(c)
        lz = h @ params['watt'] + params['batt']
        score = jnp.einsum('bh,bsh->bs', lz, x_enc)
        w = jax.nn.softmax(score, axis=-1)
        ctx = jnp.einsum('bs,bsh->bh', w, x_enc)
        out = jnp.tanh(h @ params['woz'] + ctx @ params['woc'] + params['bo'])
        prev = out
        outs.append(out)
    result = jnp.stack(outs, axis=1)                            # (B, T, H)
    logits = result @ params['wg'] + params['bg']
    return jax.nn.log_softmax(logits, axis=-1)


if __name__ == "__main__":
    # Small config consistent with the module: single-layer LSTM decoder.
    B, T, S = 2, 8, 10          # batch, target length, source length
    E, H, V = 16, 32, 50        # embedding_dim, hidden_size, vocab_size

    key = jax.random.PRNGKey(0)
    ks = jax.random.split(key, 16)

    def rnd(k, shape, scale=0.1):
        return (scale * jax.random.normal(k, shape)).astype(jnp.float32)

    params = {
        'emb':    rnd(ks[0], (V, E)),
        # LSTM: input = concat([emb, prev_out]) of width E+H -> split into wx / wp.
        'wx':     rnd(ks[1], (E, 4 * H)),
        'wp':     rnd(ks[2], (H, 4 * H)),
        'whh':    rnd(ks[3], (H, 4 * H)),
        'b_lstm': rnd(ks[4], (1, 4 * H)),      # b_ih + b_hh combined
        # Attention linear (H -> H)
        'watt':   rnd(ks[5], (H, H)),
        'batt':   rnd(ks[6], (1, H)),
        # Output linear (2H -> H), split across the [z, context] concat.
        'woz':    rnd(ks[7], (H, H)),
        'woc':    rnd(ks[8], (H, H)),
        'bo':     rnd(ks[9], (1, H)),
        # Generator linear (H -> V)
        'wg':     rnd(ks[10], (H, V)),
        'bg':     rnd(ks[11], (1, V)),
    }

    x_tok = jax.random.randint(ks[12], (B, T), 0, V).astype(jnp.int32)
    h0 = rnd(ks[13], (1, B, H), scale=0.5)
    c0 = rnd(ks[14], (1, B, H), scale=0.5)
    x_enc = rnd(ks[15], (B, S, H), scale=0.5)

    fwd = jax.jit(decoder_forward)
    y = fwd(x_tok, (h0, c0), x_enc, params)
    y = jax.block_until_ready(y)

    y_ref = decoder_forward_ref(x_tok, (h0, c0), x_enc, params)
    assert y.shape == (B, T, V), y.shape
    assert bool(jnp.all(jnp.isfinite(y))), "non-finite values in kernel output"
    # Slightly loose tolerance: EUP approx reciprocal in the attention softmax
    # compounds over the T-step recurrence.
    assert jnp.allclose(y, y_ref, rtol=5e-3, atol=5e-3), \
        f"mismatch vs pure-JAX reference: max abs diff {jnp.max(jnp.abs(y - y_ref))}"

    print("KERNEL_OK")
</pallas_src>

<mosaic_0001>
module attributes {stable_mosaic.version = 11 : i64} {
  func.func @kernel(%arg0: memref<64x128xf32, #tpu.memory_space<vmem>>, %arg1: memref<8x128xf32, #tpu.memory_space<vmem>>, %arg2: memref<8x128xf32, #tpu.memory_space<vmem>>, %arg3: memref<8x16x128xf32, #tpu.memory_space<vmem>>, %arg4: memref<128x512xf32, #tpu.memory_space<vmem>>, %arg5: memref<256x512xf32, #tpu.memory_space<vmem>>, %arg6: memref<1x512xf32, #tpu.memory_space<vmem>>, %arg7: memref<128x128xf32, #tpu.memory_space<vmem>>, %arg8: memref<1x128xf32, #tpu.memory_space<vmem>>, %arg9: memref<256x128xf32, #tpu.memory_space<vmem>>, %arg10: memref<1x128xf32, #tpu.memory_space<vmem>>, %arg11: memref<64x128xf32, #tpu.memory_space<vmem>>, %arg12: memref<64x512xf32, #tpu.memory_space<vmem>>) attributes {dimension_semantics = [], scalar_prefetch = 0 : i64, scratch_operands = 1 : i64, tpu.core_type = #tpu.core_type<tc>} {
    %c0 = arith.constant 0 : index
    %c0_0 = arith.constant 0 : index
    %0 = vector.load %arg0[%c0, %c0_0] : memref<64x128xf32, #tpu.memory_space<vmem>>, vector<64x128xf32>
    %c0_1 = arith.constant 0 : index
    %c0_2 = arith.constant 0 : index
    %1 = vector.load %arg4[%c0_1, %c0_2] : memref<128x512xf32, #tpu.memory_space<vmem>>, vector<128x512xf32>
    %cst = arith.constant dense<0.000000e+00> : vector<64x512xf32>
    %2 = tpu.matmul %0, %1, %cst {dimension_numbers = #tpu.dot_dimension_numbers<[1], [0], [0], [1], [0, 0, 1, 1], [], []>} : vector<64x128xf32>, vector<128x512xf32>, vector<64x512xf32> -> vector<64x512xf32>
    %c0_3 = arith.constant 0 : index
    %c0_4 = arith.constant 0 : index
    %3 = vector.load %arg6[%c0_3, %c0_4] : memref<1x512xf32, #tpu.memory_space<vmem>>, vector<1x512xf32>
    %4 = vector.broadcast %3 : vector<1x512xf32> to vector<64x512xf32>
    %5 = arith.addf %2, %4 : vector<64x512xf32>
    %c0_5 = arith.constant 0 : index
    %c0_6 = arith.constant 0 : index
    %6 = vector.load %arg12[%c0_5, %c0_6] : memref<64x512xf32, #tpu.memory_space<vmem>>, vector<64x512xf32>
    tpu.vector_store %arg12[%c0_5, %c0_6], %5 {strides = array<i32>} : memref<64x512xf32, #tpu.memory_space<vmem>>, vector<64x512xf32>,
    %c0_7 = arith.constant 0 : index
    %c0_8 = arith.constant 0 : index
    %7 = vector.load %arg5[%c0_7, %c0_8] : memref<256x512xf32, #tpu.memory_space<vmem>>, vector<256x512xf32>
    %c0_9 = arith.constant 0 : index
    %c0_10 = arith.constant 0 : index
    %8 = vector.load %arg7[%c0_9, %c0_10] : memref<128x128xf32, #tpu.memory_space<vmem>>, vector<128x128xf32>
    %c0_11 = arith.constant 0 : index
    %c0_12 = arith.constant 0 : index
    %9 = vector.load %arg8[%c0_11, %c0_12] : memref<1x128xf32, #tpu.memory_space<vmem>>, vector<1x128xf32>
    %c0_13 = arith.constant 0 : index
    %c0_14 = arith.constant 0 : index
    %10 = vector.load %arg9[%c0_13, %c0_14] : memref<256x128xf32, #tpu.memory_space<vmem>>, vector<256x128xf32>
    %c0_15 = arith.constant 0 : index
    %c0_16 = arith.constant 0 : index
    %11 = vector.load %arg10[%c0_15, %c0_16] : memref<1x128xf32, #tpu.memory_space<vmem>>, vector<1x128xf32>
    %c0_17 = arith.constant 0 : index
    %c0_18 = arith.constant 0 : index
    %c0_19 = arith.constant 0 : index
    %12 = vector.load %arg3[%c0_17, %c0_18, %c0_19] : memref<8x16x128xf32, #tpu.memory_space<vmem>>, vector<8x16x128xf32>
    %13 = tpu.iota {dimensions = array<i32: 2>} : vector<8x1x16xi32>
    %c10_i32 = arith.constant 10 : i32
    %14 = vector.broadcast %c10_i32 : i32 to vector<8x1x16xi32>
    %15 = arith.cmpi slt, %13, %14 : vector<8x1x16xi32>
    %c0_20 = arith.constant 0 : index
    %c0_21 = arith.constant 0 : index
    %16 = vector.load %arg1[%c0_20, %c0_21] : memref<8x128xf32, #tpu.memory_space<vmem>>, vector<8x128xf32>
    %c0_22 = arith.constant 0 : index
    %c0_23 = arith.constant 0 : index
    %17 = vector.load %arg2[%c0_22, %c0_23] : memref<8x128xf32, #tpu.memory_space<vmem>>, vector<8x128xf32>
    %cst_24 = arith.constant 0.000000e+00 : f32
    %18 = vector.broadcast %cst_24 : f32 to vector<8x128xf32>
    %c0_i32 = arith.constant 0 : i32
    %c8_i32 = arith.constant 8 : i32
    %19 = arith.addi %c0_i32, %c8_i32 : i32
    %c1_i32 = arith.constant 1 : i32
    %20:3 = scf.for %arg13 = %c0_i32 to %19 step %c1_i32 iter_args(%arg14 = %16, %arg15 = %17, %arg16 = %18) -> (vector<8x128xf32>, vector<8x128xf32>, vector<8x128xf32>)  : i32 {
      %c8_i32_26 = arith.constant 8 : i32
      %21 = arith.muli %arg13, %c8_i32_26 : i32
      %22 = tpu.assume_multiple %21, 8 : i32
      %23 = arith.index_cast %22 : i32 to index
      %c0_27 = arith.constant 0 : index
      %24 = vector.load %arg12[%23, %c0_27] : memref<64x512xf32, #tpu.memory_space<vmem>>, vector<8x512xf32>
      %25 = tpu.concatenate %arg16, %arg14 in 1 : vector<8x128xf32>, vector<8x128xf32> -> vector<8x256xf32>
      %cst_28 = arith.constant dense<0.000000e+00> : vector<8x512xf32>
      %26 = tpu.matmul %25, %7, %cst_28 {dimension_numbers = #tpu.dot_dimension_numbers<[1], [0], [0], [1], [0, 0, 1, 1], [], []>} : vector<8x256xf32>, vector<256x512xf32>, vector<8x512xf32> -> vector<8x512xf32>
      %27 = arith.addf %24, %26 : vector<8x512xf32>
      %28 = vector.extract_strided_slice %27 {offsets = [0, 0], sizes = [8, 128], strides = [1, 1]} : vector<8x512xf32> to vector<8x128xf32>
      %29 = arith.negf %28 : vector<8x128xf32>
      %30 = math.exp %29 : vector<8x128xf32>
      %cst_29 = arith.constant 1.000000e+00 : f32
      %31 = vector.broadcast %cst_29 : f32 to vector<8x128xf32>
      %32 = arith.addf %31, %30 : vector<8x128xf32>
      %33 = arith.divf %31, %32 : vector<8x128xf32>
      %34 = vector.extract_strided_slice %27 {offsets = [0, 128], sizes = [8, 128], strides = [1, 1]} : vector<8x512xf32> to vector<8x128xf32>
      %35 = arith.negf %34 : vector<8x128xf32>
      %36 = math.exp %35 : vector<8x128xf32>
      %cst_30 = arith.constant 1.000000e+00 : f32
      %37 = vector.broadcast %cst_30 : f32 to vector<8x128xf32>
      %38 = arith.addf %37, %36 : vector<8x128xf32>
      %39 = arith.divf %37, %38 : vector<8x128xf32>
      %40 = vector.extract_strided_slice %27 {offsets = [0, 256], sizes = [8, 128], strides = [1, 1]} : vector<8x512xf32> to vector<8x128xf32>
      %41 = math.tanh %40 : vector<8x128xf32>
      %42 = vector.extract_strided_slice %27 {offsets = [0, 384], sizes = [8, 128], strides = [1, 1]} : vector<8x512xf32> to vector<8x128xf32>
      %43 = arith.negf %42 : vector<8x128xf32>
      %44 = math.exp %43 : vector<8x128xf32>
      %cst_31 = arith.constant 1.000000e+00 : f32
      %45 = vector.broadcast %cst_31 : f32 to vector<8x128xf32>
      %46 = arith.addf %45, %44 : vector<8x128xf32>
      %47 = arith.divf %45, %46 : vector<8x128xf32>
      %48 = arith.mulf %39, %arg15 : vector<8x128xf32>
      %49 = arith.mulf %33, %41 : vector<8x128xf32>
      %50 = arith.addf %48, %49 : vector<8x128xf32>
      %51 = math.tanh %50 : vector<8x128xf32>
      %52 = arith.mulf %47, %51 : vector<8x128xf32>
      %cst_32 = arith.constant dense<0.000000e+00> : vector<8x128xf32>
      %53 = tpu.matmul %52, %8, %cst_32 {dimension_numbers = #tpu.dot_dimension_numbers<[1], [0], [0], [1], [0, 0, 1, 1], [], []>} : vector<8x128xf32>, vector<128x128xf32>, vector<8x128xf32> -> vector<8x128xf32>
      %54 = vector.broadcast %9 : vector<1x128xf32> to vector<8x128xf32>
      %55 = arith.addf %53, %54 : vector<8x128xf32>
      %56 = vector.shape_cast %55 : vector<8x128xf32> to vector<8x1x128xf32>
      "tpu.trace_start"() <{level = 10 : i32, message = "bqh,bsh->bqs"}> : () -> ()
      %cst_33 = arith.constant dense<0.000000e+00> : vector<8x1x16xf32>
      %57 = tpu.matmul %56, %12, %cst_33 {dimension_numbers = #tpu.dot_dimension_numbers<[2], [2], [1], [1], [0, 0, 0, 1, 1, 1], [0], [0]>} : vector<8x1x128xf32>, vector<8x16x128xf32>, vector<8x1x16xf32> -> vector<8x1x16xf32>
      %cst_34 = arith.constant -1.000000e+30 : f32
      "tpu.trace_stop"() : () -> ()
      %58 = vector.broadcast %cst_34 : f32 to vector<8x1x16xf32>
      %59 = arith.select %15, %57, %58 : vector<8x1x16xi1>, vector<8x1x16xf32>
      %cst_35 = arith.constant dense<0xFF800000> : vector<8x1xf32>
      %60 = vector.multi_reduction <maximumf>, %59, %cst_35 [2] : vector<8x1x16xf32> to vector<8x1xf32>
      %61 = vector.shape_cast %60 : vector<8x1xf32> to vector<8x1x1xf32>
      %62 = vector.broadcast %61 : vector<8x1x1xf32> to vector<8x1x16xf32>
      %63 = arith.subf %59, %62 : vector<8x1x16xf32>
      %64 = math.exp %63 : vector<8x1x16xf32>
      %cst_36 = arith.constant dense<0.000000e+00> : vector<8x1xf32>
      %65 = vector.multi_reduction <add>, %64, %cst_36 [2] : vector<8x1x16xf32> to vector<8x1xf32>
      %66 = vector.shape_cast %65 : vector<8x1xf32> to vector<8x1x1xf32>
      %67 = tpu.reciprocal %66 {approx = true} : vector<8x1x1xf32> -> vector<8x1x1xf32>
      %68 = vector.broadcast %67 : vector<8x1x1xf32> to vector<8x1x16xf32>
      %69 = arith.mulf %64, %68 : vector<8x1x16xf32>
      "tpu.trace_start"() <{level = 10 : i32, message = "bqs,bsh->bqh"}> : () -> ()
      %cst_37 = arith.constant dense<0.000000e+00> : vector<8x1x128xf32>
      %70 = tpu.matmul %69, %12, %cst_37 {dimension_numbers = #tpu.dot_dimension_numbers<[2], [1], [1], [2], [0, 0, 0, 1, 1, 2], [0], [0]>} : vector<8x1x16xf32>, vector<8x16x128xf32>, vector<8x1x128xf32> -> vector<8x1x128xf32>
      "tpu.trace_stop"() : () -> ()
      %71 = vector.shape_cast %70 : vector<8x1x128xf32> to vector<8x128xf32>
      %72 = tpu.concatenate %52, %71 in 1 : vector<8x128xf32>, vector<8x128xf32> -> vector<8x256xf32>
      %cst_38 = arith.constant dense<0.000000e+00> : vector<8x128xf32>
      %73 = tpu.matmul %72, %10, %cst_38 {dimension_numbers = #tpu.dot_dimension_numbers<[1], [0], [0], [1], [0, 0, 1, 1], [], []>} : vector<8x256xf32>, vector<256x128xf32>, vector<8x128xf32> -> vector<8x128xf32>
      %74 = vector.broadcast %11 : vector<1x128xf32> to vector<8x128xf32>
      %75 = arith.addf %73, %74 : vector<8x128xf32>
      %76 = math.tanh %75 : vector<8x128xf32>
      %77 = arith.index_cast %22 : i32 to index
      %c0_39 = arith.constant 0 : index
      %78 = vector.load %arg11[%77, %c0_39] : memref<64x128xf32, #tpu.memory_space<vmem>>, vector<8x128xf32>
      tpu.vector_store %arg11[%77, %c0_39], %76 {strides = array<i32>} : memref<64x128xf32, #tpu.memory_space<vmem>>, vector<8x128xf32>,
      scf.yield %52, %50, %76 : vector<8x128xf32>, vector<8x128xf32>, vector<8x128xf32>
    }
    %c8_i32_25 = arith.constant 8 : i32
    return
  }
}

module attributes {stable_mosaic.version = 11 : i64} {
  func.func @kernel(%arg0: i32, %arg1: memref<64x128xf32, #tpu.memory_space<vmem>>, %arg2: memref<128x128xf32, #tpu.memory_space<vmem>>, %arg3: memref<1x128xf32, #tpu.memory_space<vmem>>, %arg4: memref<64x128xf32, #tpu.memory_space<vmem>>) attributes {dimension_semantics = [#tpu.dimension_semantics<parallel>], iteration_bounds = array<i64: 1>, scalar_prefetch = 0 : i64, scratch_operands = 0 : i64, tpu.core_type = #tpu.core_type<tc>, window_params = [{transform_indices = @transform_0, window_bounds = array<i64: 64, 128>}, {pipeline_mode = #tpu.pipeline_mode<synchronous>, transform_indices = @transform_1, window_bounds = array<i64: 128, 128>}, {pipeline_mode = #tpu.pipeline_mode<synchronous>, transform_indices = @transform_2, window_bounds = array<i64: 1, 128>}, {transform_indices = @transform_3, window_bounds = array<i64: 64, 128>}]} {
    %c0 = arith.constant 0 : index
    %c0_0 = arith.constant 0 : index
    %0 = vector.load %arg1[%c0, %c0_0] : memref<64x128xf32, #tpu.memory_space<vmem>>, vector<64x128xf32>
    %c0_1 = arith.constant 0 : index
    %c0_2 = arith.constant 0 : index
    %1 = vector.load %arg2[%c0_1, %c0_2] : memref<128x128xf32, #tpu.memory_space<vmem>>, vector<128x128xf32>
    %cst = arith.constant dense<0.000000e+00> : vector<64x128xf32>
    %2 = tpu.matmul %0, %1, %cst {dimension_numbers = #tpu.dot_dimension_numbers<[1], [0], [0], [1], [0, 0, 1, 1], [], []>} : vector<64x128xf32>, vector<128x128xf32>, vector<64x128xf32> -> vector<64x128xf32>
    %c0_3 = arith.constant 0 : index
    %c0_4 = arith.constant 0 : index
    %3 = vector.load %arg3[%c0_3, %c0_4] : memref<1x128xf32, #tpu.memory_space<vmem>>, vector<1x128xf32>
    %4 = vector.broadcast %3 : vector<1x128xf32> to vector<64x128xf32>
    %5 = arith.addf %2, %4 : vector<64x128xf32>
    %6 = tpu.iota {dimensions = array<i32: 1>} : vector<64x128xi32>
    %c50_i32 = arith.constant 50 : i32
    %7 = vector.broadcast %c50_i32 : i32 to vector<64x128xi32>
    %8 = arith.cmpi slt, %6, %7 : vector<64x128xi32>
    %cst_5 = arith.constant -1.000000e+30 : f32
    %9 = vector.broadcast %cst_5 : f32 to vector<64x128xf32>
    %10 = arith.select %8, %5, %9 : vector<64x128xi1>, vector<64x128xf32>
    %cst_6 = arith.constant dense<0xFF800000> : vector<64xf32>
    %11 = vector.multi_reduction <maximumf>, %10, %cst_6 [1] : vector<64x128xf32> to vector<64xf32>
    %12 = vector.shape_cast %11 : vector<64xf32> to vector<64x1xf32>
    %13 = vector.broadcast %12 : vector<64x1xf32> to vector<64x128xf32>
    %14 = arith.subf %10, %13 : vector<64x128xf32>
    %15 = math.exp %14 : vector<64x128xf32>
    %cst_7 = arith.constant dense<0.000000e+00> : vector<64xf32>
    %16 = vector.multi_reduction <add>, %15, %cst_7 [1] : vector<64x128xf32> to vector<64xf32>
    %17 = vector.shape_cast %16 : vector<64xf32> to vector<64x1xf32>
    %18 = math.log %17 : vector<64x1xf32>
    %19 = vector.broadcast %18 : vector<64x1xf32> to vector<64x128xf32>
    %20 = arith.subf %14, %19 : vector<64x128xf32>
    %c0_8 = arith.constant 0 : index
    %c0_9 = arith.constant 0 : index
    %21 = vector.load %arg4[%c0_8, %c0_9] : memref<64x128xf32, #tpu.memory_space<vmem>>, vector<64x128xf32>
    tpu.vector_store %arg4[%c0_8, %c0_9], %20 {strides = array<i32>} : memref<64x128xf32, #tpu.memory_space<vmem>>, vector<64x128xf32>,
    return
  }
  func.func @transform_0(%arg0: i32) -> (i32, i32) {
    %c0_i32 = arith.constant 0 : i32
    %c0_i32_0 = arith.constant 0 : i32
    return %arg0, %c0_i32 : i32, i32
  }
  func.func @transform_1(%arg0: i32) -> (i32, i32) {
    %c0_i32 = arith.constant 0 : i32
    %c0_i32_0 = arith.constant 0 : i32
    %c0_i32_1 = arith.constant 0 : i32
    return %c0_i32, %c0_i32_0 : i32, i32
  }
  func.func @transform_2(%arg0: i32) -> (i32, i32) {
    %c0_i32 = arith.constant 0 : i32
    %c0_i32_0 = arith.constant 0 : i32
    %c0_i32_1 = arith.constant 0 : i32
    return %c0_i32, %c0_i32_0 : i32, i32
  }
  func.func @transform_3(%arg0: i32) -> (i32, i32) {
    %c0_i32 = arith.constant 0 : i32
    %c0_i32_0 = arith.constant 0 : i32
    return %arg0, %c0_i32 : i32, i32
  }
}

</mosaic_0001>

<bundles_post_ra>
// kernel: decoder_forward.3
= control target key start
LH: loop header
LB: loop body
LE: loop exit
PB: predicated region body
PF: predicated region fallthrough
CT: control target
= control target key end

     0   :  { %v150_v24 = vlaneseq  ;;  %s545_s1 = inlined_call_operand.vmem [shape: f32[128,128], index: 1, kind: input, shape index: {}]   ;;  %s546_s0 = inlined_call_operand.vmem [shape: f32[64,128], index: 0, kind: input, shape index: {}]   ;;  %s547_s2 = inlined_call_operand.vmem [shape: f32[1,128], index: 2, kind: input, shape index: {}]   ;;  %s548_s3 = inlined_call_operand.vmem [shape: f32[64,128], index: 3, kind: output, shape index: {}]  }
   0x1   :  { %v37_v0 = vld [vmem:[%s545_s1 + $0x78] sm:$0xff]  ;;  %v36_v1 = vld [vmem:[%s545_s1 + $0x70] sm:$0xff]  ;;  %v35_v2 = vld [vmem:[%s545_s1 + $0x68] sm:$0xff] }
   0x2   :  { %278 = vmatprep.subr.mxu0 %v37_v0  ;;  %322 = vmatprep.subr.mxu1 %v37_v0  ;;  %v34_v3 = vld [vmem:[%s545_s1 + $0x60] sm:$0xff]  ;;  %v33_v4 = vld [vmem:[%s545_s1 + $0x58] sm:$0xff]  ;;  %v32_v5 = vld [vmem:[%s545_s1 + $0x50] sm:$0xff]  ;;  %v151_v25 = vand.u32 127, %v150_v24 }
   0x3   :  { %279 = vmatpush3.msra.mxu0 %v37_v0  ;;  %338 = vmatpush3.msra.mxu1 %v37_v0  ;;  %v31_v6 = vld [vmem:[%s545_s1 + $0x48] sm:$0xff]  ;;  %v30_v7 = vld [vmem:[%s545_s1 + $0x40] sm:$0xff]  ;;  %v29_v8 = vld [vmem:[%s545_s1 + $0x38] sm:$0xff] }
   0x4   :  { %280 = vmatprep.subr.mxu0 %v36_v1  ;;  %323 = vmatprep.subr.mxu1 %v36_v1  ;;  %v28_v9 = vld [vmem:[%s545_s1 + $0x30] sm:$0xff]  ;;  %v27_v10 = vld [vmem:[%s545_s1 + $0x28] sm:$0xff]  ;;  %v26_v11 = vld [vmem:[%s545_s1 + $0x20] sm:$0xff]  ;;  %vm152_vm0 = vcmp.lt.s32.totalorder %v151_v25, 50 }
   0x5   :  { %281 = vmatpush3.msra.mxu0 %v36_v1  ;;  %339 = vmatpush3.msra.mxu1 %v36_v1  ;;  %v25_v12 = vld [vmem:[%s545_s1 + $0x18] sm:$0xff]  ;;  %v24_v13 = vld [vmem:[%s545_s1 + $0x10] sm:$0xff]  ;;  %v23_v14 = vld [vmem:[%s545_s1 + $0x8] sm:$0xff] }
   0x6   :  { %282 = vmatprep.subr.mxu0 %v35_v2  ;;  %324 = vmatprep.subr.mxu1 %v35_v2  ;;  %v22_v15 = vld [vmem:[%s545_s1] sm:$0xff]  ;;  %v15_v18 = vld [vmem:[%s546_s0 + $0x8] sm:$0xff]  ;;  %v16_v20 = vld [vmem:[%s546_s0 + $0x10] sm:$0xff] }
   0x7   :  { %283 = vmatpush3.msra.mxu0 %v35_v2  ;;  %340 = vmatpush3.msra.mxu1 %v35_v2  ;;  %v14_v16 = vld [vmem:[%s546_s0] sm:$0xff]  ;;  %v19_v19 = vld [vmem:[%s546_s0 + $0x28] sm:$0xff]  ;;  %v20_v21 = vld [vmem:[%s546_s0 + $0x30] sm:$0xff] }
   0x8   :  { %284 = vmatprep.subr.mxu0 %v34_v3  ;;  %325 = vmatprep.subr.mxu1 %v34_v3  ;;  %v18_v17 = vld [vmem:[%s546_s0 + $0x20] sm:$0xff]  ;;  %v17_v22 = vld [vmem:[%s546_s0 + $0x18] sm:$0xff] }
   0x9   :  { %285 = vmatpush3.msra.mxu0 %v34_v3  ;;  %341 = vmatpush3.msra.mxu1 %v34_v3  ;;  %v21_v23 = vld [vmem:[%s546_s0 + $0x38] sm:$0xff]  ;;  %v253_v26 = vld [vmem:[%s547_s2] ss:$0 sm:$0xff] }
   0xa   :  { %286 = vmatprep.subr.mxu0 %v33_v4  ;;  %326 = vmatprep.subr.mxu1 %v33_v4 }
   0xb   :  { %287 = vmatpush3.msra.mxu0 %v33_v4  ;;  %342 = vmatpush3.msra.mxu1 %v33_v4 }
   0xc   :  { %288 = vmatprep.subr.mxu0 %v32_v5  ;;  %327 = vmatprep.subr.mxu1 %v32_v5 }
   0xd   :  { %289 = vmatpush3.msra.mxu0 %v32_v5  ;;  %343 = vmatpush3.msra.mxu1 %v32_v5 }
   0xe   :  { %290 = vmatprep.subr.mxu0 %v31_v6  ;;  %328 = vmatprep.subr.mxu1 %v31_v6 }
   0xf   :  { %291 = vmatpush3.msra.mxu0 %v31_v6  ;;  %344 = vmatpush3.msra.mxu1 %v31_v6 }
  0x10   :  { %292 = vmatprep.subr.mxu0 %v30_v7  ;;  %329 = vmatprep.subr.mxu1 %v30_v7 }
  0x11   :  { %293 = vmatpush3.msra.mxu0 %v30_v7  ;;  %345 = vmatpush3.msra.mxu1 %v30_v7 }
  0x12   :  { %294 = vmatprep.subr.mxu0 %v29_v8  ;;  %330 = vmatprep.subr.mxu1 %v29_v8 }
  0x13   :  { %295 = vmatpush3.msra.mxu0 %v29_v8  ;;  %346 = vmatpush3.msra.mxu1 %v29_v8 }
  0x14   :  { %296 = vmatprep.subr.mxu0 %v28_v9  ;;  %331 = vmatprep.subr.mxu1 %v28_v9 }
  0x15   :  { %297 = vmatpush3.msra.mxu0 %v28_v9  ;;  %347 = vmatpush3.msra.mxu1 %v28_v9 }
  0x16   :  { %298 = vmatprep.subr.mxu0 %v27_v10  ;;  %332 = vmatprep.subr.mxu1 %v27_v10 }
  0x17   :  { %299 = vmatpush3.msra.mxu0 %v27_v10  ;;  %348 = vmatpush3.msra.mxu1 %v27_v10 }
  0x18   :  { %300 = vmatprep.subr.mxu0 %v26_v11  ;;  %333 = vmatprep.subr.mxu1 %v26_v11 }
  0x19   :  { %301 = vmatpush3.msra.mxu0 %v26_v11  ;;  %349 = vmatpush3.msra.mxu1 %v26_v11 }
  0x1a   :  { %302 = vmatprep.subr.mxu0 %v25_v12  ;;  %334 = vmatprep.subr.mxu1 %v25_v12 }
  0x1b   :  { %303 = vmatpush3.msra.mxu0 %v25_v12  ;;  %350 = vmatpush3.msra.mxu1 %v25_v12 }
  0x1c   :  { %304 = vmatprep.subr.mxu0 %v24_v13  ;;  %335 = vmatprep.subr.mxu1 %v24_v13 }
  0x1d   :  { %305 = vmatpush3.msra.mxu0 %v24_v13  ;;  %351 = vmatpush3.msra.mxu1 %v24_v13 }
  0x1e   :  { %306 = vmatprep.subr.mxu0 %v23_v14  ;;  %336 = vmatprep.subr.mxu1 %v23_v14 }
  0x1f   :  { %307 = vmatpush3.msra.mxu0 %v23_v14  ;;  %352 = vmatpush3.msra.mxu1 %v23_v14 }
  0x20   :  { %308 = vmatprep.subr.mxu0 %v22_v15  ;;  %337 = vmatprep.subr.mxu1 %v22_v15 }
  0x21   :  { %309 = vmatpush3.msra.mxu0 %v22_v15  ;;  %353 = vmatpush3.msra.mxu1 %v22_v15 }
  0x22   :  { %310 = vmatprep.mubr.f32.mxu0 %v14_v16  ;;  %316 = vmatprep.mubr.f32.mxu1 %v18_v17 }
  0x23   :  { %311 = vmatmul.mubr.f32.vlgmr.msra.gmra.mxu0 %v15_v18  ;;  %317 = vmatmul.mubr.f32.vlgmr.msra.gmra.mxu1 %v19_v19 }
  0x24   :  { %313 = vmatprep.mubr.f32.mxu0 %v16_v20  ;;  %319 = vmatprep.mubr.f32.mxu1 %v20_v21 }
  0x27   :  { %314 = vmatmul.mubr.f32.gmra.mxu0 %v17_v22  ;;  %320 = vmatmul.mubr.f32.gmra.mxu1 %v21_v23 }
  0xe3   :  { %v312_v27 = vpop.f32.mrf.mxu0  ;;  %v318_v28 = vpop.f32.mrf.mxu1 }
  0xe4   :  { %v117_v29 = vadd.f32 %v312_v27, %v253_v26  ;;  %v137_v30 = vadd.f32 %v318_v28, %v253_v26 }
  0xe5   :  { %v111_v31 = vpop.f32.mrf.mxu0  ;;  %v131_v32 = vpop.f32.mrf.mxu1 }
  0xe6   :  { %v112_v33 = vadd.f32 %v253_v26, %v111_v31  ;;  %v158_v34 = vsel %vm152_vm0, %v137_v30, -1e+30  ;;  %v154_v35 = vsel %vm152_vm0, %v117_v29, -1e+30  ;;  %v132_v41 = vadd.f32 %v253_v26, %v131_v32 }
  0xe7   :  { %171 = vmax.xlane.f32.xlu1 %v158_v34  ;;  %163 = vmax.xlane.f32.xlu0 %v154_v35  ;;  %v315_v36 = vpop.f32.mrf.mxu0  ;;  %v321_v37 = vpop.f32.mrf.mxu1 }
  0xe8   :  { %v127_v38 = vadd.f32 %v315_v36, %v253_v26  ;;  %v153_v44 = vsel %vm152_vm0, %v112_v33, -1e+30  ;;  %v147_v45 = vadd.f32 %v321_v37, %v253_v26  ;;  %v157_v48 = vsel %vm152_vm0, %v132_v41, -1e+30 }
  0xe9   :  { %v121_v39 = vpop.f32.mrf.mxu0  ;;  %v141_v40 = vpop.f32.mrf.mxu1 }
  0xea   :  { %v156_v42 = vsel %vm152_vm0, %v127_v38, -1e+30  ;;  %v122_v43 = vadd.f32 %v253_v26, %v121_v39  ;;  %v142_v46 = vadd.f32 %v253_v26, %v141_v40  ;;  %v160_v49 = vsel %vm152_vm0, %v147_v45, -1e+30 }
  0xeb   :  { %167 = vmax.xlane.f32.xlu1 %v156_v42  ;;  %161 = vmax.xlane.f32.xlu0 %v153_v44 }
  0xec   :  { %v155_v47 = vsel %vm152_vm0, %v122_v43, -1e+30  ;;  %v159_v50 = vsel %vm152_vm0, %v142_v46, -1e+30 }
  0xef   :  { %165 = vmax.xlane.f32.xlu1 %v155_v47  ;;  %169 = vmax.xlane.f32.xlu0 %v157_v48 }
  0xf3   :  { %175 = vmax.xlane.f32.xlu1 %v160_v49  ;;  %173 = vmax.xlane.f32.xlu0 %v159_v50 }
 0x170   :  { %v172_v51 = vpop.xlane.xlu1 %171  ;;  %v164_v52 = vpop.xlane.xlu0 %163 }
 0x171   :  { %v489_v53 = vsub.f32 %v158_v34, %v172_v51  ;;  %v491_v54 = vsub.f32 %v154_v35, %v164_v52 }
 0x173   :  { %v187_v55 = vmul.f32 1.442695, %v491_v54  ;;  %v195_v58 = vmul.f32 1.442695, %v489_v53 }
 0x174   :  { %v168_v56 = vpop.xlane.xlu1 %167  ;;  %v162_v57 = vpop.xlane.xlu0 %161 }
 0x175   :  { %v495_v59 = vsub.f32 %v156_v42, %v168_v56  ;;  %v497_v60 = vsub.f32 %v153_v44, %v162_v57  ;;  %354 = vpow2.f32 %v187_v55 }
 0x176   :  { %356 = vpow2.f32 %v195_v58 }
 0x177   :  { %v185_v61 = vmul.f32 1.442695, %v497_v60  ;;  %v191_v0 = vmul.f32 1.442695, %v495_v59 }
 0x178   :  { %v166_v62 = vpop.xlane.xlu1 %165  ;;  %v170_v63 = vpop.xlane.xlu0 %169 }
 0x179   :  { %v501_v1 = vsub.f32 %v157_v48, %v170_v63  ;;  %358 = vpow2.f32 %v185_v61  ;;  %v503_v2 = vsub.f32 %v155_v47, %v166_v62 }
 0x17a   :  { %360 = vpow2.f32 %v191_v0 }
 0x17b   :  { %v193_v3 = vmul.f32 1.442695, %v501_v1  ;;  %v189_v7 = vmul.f32 1.442695, %v503_v2 }
 0x17c   :  { %v176_v4 = vpop.xlane.xlu1 %175  ;;  %v174_v5 = vpop.xlane.xlu0 %173 }
 0x17d   :  { %v506_v6 = vsub.f32 %v160_v49, %v176_v4  ;;  %362 = vpow2.f32 %v193_v3  ;;  %v509_v8 = vsub.f32 %v159_v50, %v174_v5 }
 0x17f   :  { %v199_v9 = vmul.f32 1.442695, %v506_v6  ;;  %v197_v10 = vmul.f32 1.442695, %v509_v8 }
 0x181   :  { %364 = vpow2.f32 %v199_v9 }
 0x182   :  { %366 = vpow2.f32 %v189_v7  ;;  %v355_v11 = vpop.eup %354 }
 0x183   :  { %203 = vadd.xlane.f32.xlu1 %v355_v11  ;;  %v357_v12 = vpop.eup %356  ;;  %368 = vpow2.f32 %v197_v10 }
 0x186   :  { %v359_v13 = vpop.eup %358 }
 0x187   :  { %211 = vadd.xlane.f32.xlu1 %v357_v12  ;;  %201 = vadd.xlane.f32.xlu0 %v359_v13  ;;  %v361_v14 = vpop.eup %360 }
 0x18a   :  { %v363_v15 = vpop.eup %362 }
 0x18b   :  { %207 = vadd.xlane.f32.xlu1 %v361_v14  ;;  %209 = vadd.xlane.f32.xlu0 %v363_v15 }
 0x18e   :  { %v365_v16 = vpop.eup %364 }
 0x18f   :  { %v367_v17 = vpop.eup %366  ;;  %215 = vadd.xlane.f32.xlu1 %v365_v16 }
 0x190   :  { %205 = vadd.xlane.f32.xlu0 %v367_v17  ;;  %v369_v18 = vpop.eup %368 }
 0x194   :  { %213 = vadd.xlane.f32.xlu0 %v369_v18 }
 0x20c   :  { %v204_v19 = vpop.xlane.xlu1 %203 }
 0x20d   :  { %370 = vlog2.f32 %v204_v19 }
 0x210   :  { %v212_v20 = vpop.xlane.xlu1 %211  ;;  %v202_v21 = vpop.xlane.xlu0 %201 }
 0x211   :  { %372 = vlog2.f32 %v212_v20 }
 0x212   :  { %374 = vlog2.f32 %v202_v21 }
 0x214   :  { %v208_v22 = vpop.xlane.xlu1 %207  ;;  %v210_v23 = vpop.xlane.xlu0 %209 }
 0x215   :  { %376 = vlog2.f32 %v208_v22 }
 0x216   :  { %378 = vlog2.f32 %v210_v23 }
 0x218   :  { %v216_v24 = vpop.xlane.xlu1 %215 }
 0x219   :  { %v206_v25 = vpop.xlane.xlu0 %205  ;;  %380 = vlog2.f32 %v216_v24 }
 0x21a   :  { %v371_v26 = vpop.eup %370  ;;  %382 = vlog2.f32 %v206_v25 }
 0x21b   :  { %v220_v27 = vmul.f32 0.6931472, %v371_v26 }
 0x21d   :  { %v214_v28 = vpop.xlane.xlu0 %213  ;;  %v234_v29 = vsub.f32 %v491_v54, %v220_v27 }
 0x21e   :  { %384 = vlog2.f32 %v214_v28  ;;  %v373_v30 = vpop.eup %372 }
 0x21f   :  { %v375_v31 = vpop.eup %374  ;;  %242 = vst [vmem:[%s548_s3 + $0x8] sm:$0xff] %v234_v29  ;;  %v228_v32 = vmul.f32 0.6931472, %v373_v30 }
 0x220   :  { %v218_v33 = vmul.f32 0.6931472, %v375_v31 }
 0x221   :  { %v238_v34 = vsub.f32 %v489_v53, %v228_v32 }
 0x222   :  { %v377_v35 = vpop.eup %376  ;;  %v233_v36 = vsub.f32 %v497_v60, %v218_v33 }
 0x223   :  { %v379_v37 = vpop.eup %378  ;;  %246 = vst [vmem:[%s548_s3 + $0x28] sm:$0xff] %v238_v34  ;;  %v224_v38 = vmul.f32 0.6931472, %v377_v35 }
 0x224   :  { %241 = vst [vmem:[%s548_s3] sm:$0xff] %v233_v36  ;;  %v226_v39 = vmul.f32 0.6931472, %v379_v37 }
 0x225   :  { %v236_v40 = vsub.f32 %v495_v59, %v224_v38 }
 0x226   :  { %v381_v41 = vpop.eup %380  ;;  %v237_v42 = vsub.f32 %v501_v1, %v226_v39 }
 0x227   :  { %v383_v43 = vpop.eup %382  ;;  %244 = vst [vmem:[%s548_s3 + $0x18] sm:$0xff] %v236_v40  ;;  %v232_v44 = vmul.f32 0.6931472, %v381_v41 }
 0x228   :  { %245 = vst [vmem:[%s548_s3 + $0x20] sm:$0xff] %v237_v42  ;;  %v222_v45 = vmul.f32 0.6931472, %v383_v43 }
 0x229   :  { %v240_v46 = vsub.f32 %v506_v6, %v232_v44 }
 0x22a   :  { %v235_v48 = vsub.f32 %v503_v2, %v222_v45 }
 0x22b   :  { %v385_v47 = vpop.eup %384  ;;  %248 = vst [vmem:[%s548_s3 + $0x38] sm:$0xff] %v240_v46 }
 0x22c   :  { %v230_v49 = vmul.f32 0.6931472, %v385_v47  ;;  %243 = vst [vmem:[%s548_s3 + $0x10] sm:$0xff] %v235_v48 }
 0x22e   :  { %v239_v50 = vsub.f32 %v509_v8, %v230_v49 }
 0x230   :  { %247 = vst [vmem:[%s548_s3 + $0x30] sm:$0xff] %v239_v50 }

// kernel: decoder_forward.2
= control target key start
LH: loop header
LB: loop body
LE: loop exit
PB: predicated region body
PF: predicated region fallthrough
CT: control target
= control target key end

     0   :  { %v2667_v3 = vmov 0.0   ;;  %s4399_s4 = inlined_call_operand.vmem [shape: f32[128,512], index: 4, kind: input, shape index: {}]   ;;  %s4400_s11 = inlined_call_operand.vmem [shape: f32[64,128], index: 11, kind: output, shape index: {}]   ;;  %s4401_s0 = inlined_call_operand.vmem [shape: f32[64,128], index: 0, kind: input, shape index: {}]   ;;  %s4402_s5 = inlined_call_operand.vmem [shape: f32[256,512], index: 5, kind: input, shape index: {}]   ;;  %s4403_s7 = inlined_call_operand.vmem [shape: f32[128,128], index: 7, kind: input, shape index: {}]   ;;  %s4404_s8 = inlined_call_operand.vmem [shape: f32[1,128], index: 8, kind: input, shape index: {}]   ;;  %s4405_s9 = inlined_call_operand.vmem [shape: f32[256,128], index: 9, kind: input, shape index: {}]   ;;  %s4406_s3 = inlined_call_operand.vmem [shape: f32[8,16,128], index: 3, kind: input, shape index: {}]   ;;  %s4407_s10 = inlined_call_operand.vmem [shape: f32[1,128], index: 10, kind: input, shape index: {}]   ;;  %s4408_s1 = inlined_call_operand.vmem [shape: f32[8,128], index: 1, kind: input, shape index: {}]   ;;  %s4409_s2 = inlined_call_operand.vmem [shape: f32[8,128], index: 2, kind: input, shape index: {}]   ;;  %s4410_s6 = inlined_call_operand.vmem [shape: f32[1,512], index: 6, kind: input, shape index: {}]  }
   0x1   :  { %v107_v0 = vld [vmem:[%s4399_s4 + $0x1e8] sm:$0xff]  ;;  %v109_v1 = vld [vmem:[%s4399_s4 + $0x1f8] sm:$0xff]  ;;  %v106_v2 = vld [vmem:[%s4399_s4 + $0x1e0] sm:$0xff]  ;;  %196 = vmatprep.mubr.f32.mxu0 %v2667_v3  ;;  %309 = vmatprep.mubr.f32.mxu1 %v2667_v3 }
   0x2   :  { %132 = vmatprep.subr.mxu0 %v107_v0  ;;  %245 = vmatprep.subr.mxu1 %v109_v1  ;;  %v108_v4 = vld [vmem:[%s4399_s4 + $0x1f0] sm:$0xff]  ;;  %v103_v5 = vld [vmem:[%s4399_s4 + $0x1c8] sm:$0xff]  ;;  %v105_v6 = vld [vmem:[%s4399_s4 + $0x1d8] sm:$0xff] }
   0x3   :  { %133 = vmatpush1.msra.mxu0 %v106_v2  ;;  %246 = vmatpush1.msra.mxu1 %v108_v4  ;;  %v102_v7 = vld [vmem:[%s4399_s4 + $0x1c0] sm:$0xff]  ;;  %v104_v8 = vld [vmem:[%s4399_s4 + $0x1d0] sm:$0xff]  ;;  %v99_v9 = vld [vmem:[%s4399_s4 + $0x1a8] sm:$0xff] }
   0x4   :  { %134 = vmatprep.subr.mxu0 %v103_v5  ;;  %247 = vmatprep.subr.mxu1 %v105_v6  ;;  %v101_v10 = vld [vmem:[%s4399_s4 + $0x1b8] sm:$0xff]  ;;  %v98_v11 = vld [vmem:[%s4399_s4 + $0x1a0] sm:$0xff]  ;;  %v100_v12 = vld [vmem:[%s4399_s4 + $0x1b0] sm:$0xff] }
   0x5   :  { %135 = vmatpush1.msra.mxu0 %v102_v7  ;;  %248 = vmatpush1.msra.mxu1 %v104_v8  ;;  %v95_v13 = vld [vmem:[%s4399_s4 + $0x188] sm:$0xff]  ;;  %v97_v14 = vld [vmem:[%s4399_s4 + $0x198] sm:$0xff]  ;;  %v94_v15 = vld [vmem:[%s4399_s4 + $0x180] sm:$0xff] }
   0x6   :  { %136 = vmatprep.subr.mxu0 %v99_v9  ;;  %249 = vmatprep.subr.mxu1 %v101_v10  ;;  %v96_v16 = vld [vmem:[%s4399_s4 + $0x190] sm:$0xff]  ;;  %v91_v17 = vld [vmem:[%s4399_s4 + $0x168] sm:$0xff]  ;;  %v93_v18 = vld [vmem:[%s4399_s4 + $0x178] sm:$0xff]  ;;  %v4411_v10 = vlaneseq }
   0x7   :  { %137 = vmatpush1.msra.mxu0 %v98_v11  ;;  %250 = vmatpush1.msra.mxu1 %v100_v12  ;;  %v90_v19 = vld [vmem:[%s4399_s4 + $0x160] sm:$0xff]  ;;  %v92_v20 = vld [vmem:[%s4399_s4 + $0x170] sm:$0xff]  ;;  %v87_v21 = vld [vmem:[%s4399_s4 + $0x148] sm:$0xff] }
   0x8   :  { %138 = vmatprep.subr.mxu0 %v95_v13  ;;  %251 = vmatprep.subr.mxu1 %v97_v14  ;;  %v89_v22 = vld [vmem:[%s4399_s4 + $0x158] sm:$0xff]  ;;  %v86_v23 = vld [vmem:[%s4399_s4 + $0x140] sm:$0xff]  ;;  %v88_v24 = vld [vmem:[%s4399_s4 + $0x150] sm:$0xff]  ;;  %v2964_v11 = vand.u32 127, %v4411_v10 }
   0x9   :  { %139 = vmatpush1.msra.mxu0 %v94_v15  ;;  %252 = vmatpush1.msra.mxu1 %v96_v16  ;;  %v83_v25 = vld [vmem:[%s4399_s4 + $0x128] sm:$0xff]  ;;  %v85_v26 = vld [vmem:[%s4399_s4 + $0x138] sm:$0xff]  ;;  %v82_v27 = vld [vmem:[%s4399_s4 + $0x120] sm:$0xff] }
   0xa   :  { %140 = vmatprep.subr.mxu0 %v91_v17  ;;  %253 = vmatprep.subr.mxu1 %v93_v18  ;;  %v84_v28 = vld [vmem:[%s4399_s4 + $0x130] sm:$0xff]  ;;  %v79_v29 = vld [vmem:[%s4399_s4 + $0x108] sm:$0xff]  ;;  %v81_v30 = vld [vmem:[%s4399_s4 + $0x118] sm:$0xff]  ;;  %4438 = vst [vmem:[#allocation3_spill] sm:$0xff] %v2964_v11  ;;  %vm586_vm0 = vcmp.lt.s32.totalorder %v2964_v11, 10 }
   0xb   :  { %141 = vmatpush1.msra.mxu0 %v90_v19  ;;  %254 = vmatpush1.msra.mxu1 %v92_v20  ;;  %v78_v31 = vld [vmem:[%s4399_s4 + $0x100] sm:$0xff]  ;;  %v80_v32 = vld [vmem:[%s4399_s4 + $0x110] sm:$0xff]  ;;  %v75_v33 = vld [vmem:[%s4399_s4 + $0xe8] sm:$0xff] }
   0xc   :  { %142 = vmatprep.subr.mxu0 %v87_v21  ;;  %255 = vmatprep.subr.mxu1 %v89_v22  ;;  %v77_v34 = vld [vmem:[%s4399_s4 + $0xf8] sm:$0xff]  ;;  %v74_v35 = vld [vmem:[%s4399_s4 + $0xe0] sm:$0xff]  ;;  %v76_v36 = vld [vmem:[%s4399_s4 + $0xf0] sm:$0xff] }
   0xd   :  { %143 = vmatpush1.msra.mxu0 %v86_v23  ;;  %256 = vmatpush1.msra.mxu1 %v88_v24  ;;  %v71_v37 = vld [vmem:[%s4399_s4 + $0xc8] sm:$0xff]  ;;  %v73_v38 = vld [vmem:[%s4399_s4 + $0xd8] sm:$0xff]  ;;  %v70_v39 = vld [vmem:[%s4399_s4 + $0xc0] sm:$0xff] }
   0xe   :  { %144 = vmatprep.subr.mxu0 %v83_v25  ;;  %257 = vmatprep.subr.mxu1 %v85_v26  ;;  %v72_v40 = vld [vmem:[%s4399_s4 + $0xd0] sm:$0xff]  ;;  %v67_v41 = vld [vmem:[%s4399_s4 + $0xa8] sm:$0xff]  ;;  %v69_v42 = vld [vmem:[%s4399_s4 + $0xb8] sm:$0xff] }
   0xf   :  { %145 = vmatpush1.msra.mxu0 %v82_v27  ;;  %258 = vmatpush1.msra.mxu1 %v84_v28  ;;  %v66_v43 = vld [vmem:[%s4399_s4 + $0xa0] sm:$0xff]  ;;  %v68_v44 = vld [vmem:[%s4399_s4 + $0xb0] sm:$0xff]  ;;  %v63_v45 = vld [vmem:[%s4399_s4 + $0x88] sm:$0xff] }
  0x10   :  { %146 = vmatprep.subr.mxu0 %v79_v29  ;;  %259 = vmatprep.subr.mxu1 %v81_v30  ;;  %v65_v46 = vld [vmem:[%s4399_s4 + $0x98] sm:$0xff]  ;;  %v62_v47 = vld [vmem:[%s4399_s4 + $0x80] sm:$0xff]  ;;  %v64_v48 = vld [vmem:[%s4399_s4 + $0x90] sm:$0xff] }
  0x11   :  { %147 = vmatpush1.msra.mxu0 %v78_v31  ;;  %260 = vmatpush1.msra.mxu1 %v80_v32  ;;  %v59_v49 = vld [vmem:[%s4399_s4 + $0x68] sm:$0xff]  ;;  %v61_v50 = vld [vmem:[%s4399_s4 + $0x78] sm:$0xff]  ;;  %v58_v51 = vld [vmem:[%s4399_s4 + $0x60] sm:$0xff] }
  0x12   :  { %148 = vmatprep.subr.mxu0 %v75_v33  ;;  %261 = vmatprep.subr.mxu1 %v77_v34  ;;  %v60_v52 = vld [vmem:[%s4399_s4 + $0x70] sm:$0xff]  ;;  %v55_v53 = vld [vmem:[%s4399_s4 + $0x48] sm:$0xff]  ;;  %v57_v54 = vld [vmem:[%s4399_s4 + $0x58] sm:$0xff] }
  0x13   :  { %149 = vmatpush1.msra.mxu0 %v74_v35  ;;  %262 = vmatpush1.msra.mxu1 %v76_v36  ;;  %v54_v55 = vld [vmem:[%s4399_s4 + $0x40] sm:$0xff]  ;;  %v56_v56 = vld [vmem:[%s4399_s4 + $0x50] sm:$0xff]  ;;  %v51_v57 = vld [vmem:[%s4399_s4 + $0x28] sm:$0xff] }
  0x14   :  { %150 = vmatprep.subr.mxu0 %v71_v37  ;;  %263 = vmatprep.subr.mxu1 %v73_v38  ;;  %v53_v58 = vld [vmem:[%s4399_s4 + $0x38] sm:$0xff]  ;;  %v50_v59 = vld [vmem:[%s4399_s4 + $0x20] sm:$0xff]  ;;  %v52_v60 = vld [vmem:[%s4399_s4 + $0x30] sm:$0xff] }
  0x15   :  { %151 = vmatpush1.msra.mxu0 %v70_v39  ;;  %264 = vmatpush1.msra.mxu1 %v72_v40  ;;  %v47_v61 = vld [vmem:[%s4399_s4 + $0x8] sm:$0xff]  ;;  %v49_v62 = vld [vmem:[%s4399_s4 + $0x18] sm:$0xff]  ;;  %v46_v63 = vld [vmem:[%s4399_s4] sm:$0xff] }
  0x16   :  { %152 = vmatprep.subr.mxu0 %v67_v41  ;;  %265 = vmatprep.subr.mxu1 %v69_v42  ;;  %v48_v0 = vld [vmem:[%s4399_s4 + $0x10] sm:$0xff]  ;;  %v38_v1 = vld [vmem:[%s4401_s0] sm:$0xff]  ;;  %v39_v2 = vld [vmem:[%s4401_s0 + $0x8] sm:$0xff] }
  0x17   :  { %153 = vmatpush1.msra.mxu0 %v66_v43  ;;  %266 = vmatpush1.msra.mxu1 %v68_v44  ;;  %v40_v4 = vld [vmem:[%s4401_s0 + $0x10] sm:$0xff]  ;;  %v41_v5 = vld [vmem:[%s4401_s0 + $0x18] sm:$0xff]  ;;  %v42_v6 = vld [vmem:[%s4401_s0 + $0x20] sm:$0xff] }
  0x18   :  { %154 = vmatprep.subr.mxu0 %v63_v45  ;;  %267 = vmatprep.subr.mxu1 %v65_v46  ;;  %v43_v7 = vld [vmem:[%s4401_s0 + $0x28] sm:$0xff]  ;;  %v44_v8 = vld [vmem:[%s4401_s0 + $0x30] sm:$0xff]  ;;  %v45_v9 = vld [vmem:[%s4401_s0 + $0x38] sm:$0xff] }
  0x19   :  { %155 = vmatpush1.msra.mxu0 %v62_v47  ;;  %268 = vmatpush1.msra.mxu1 %v64_v48  ;;  %v2970_v12 = vld [vmem:[%s4402_s5] sm:$0xff]  ;;  %v2980_v13 = vld [vmem:[%s4402_s5 + $0x10] sm:$0xff]  ;;  %v2985_v14 = vld [vmem:[%s4402_s5 + $0x18] sm:$0xff] }
  0x1a   :  { %156 = vmatprep.subr.mxu0 %v59_v49  ;;  %269 = vmatprep.subr.mxu1 %v61_v50  ;;  %4439 = vst [vmem:[#allocation4_spill] sm:$0xff] %v2970_v12  ;;  %4441 = vst [vmem:[#allocation6_spill] sm:$0xff] %v2980_v13  ;;  %v2990_v15 = vld [vmem:[%s4402_s5 + $0x20] sm:$0xff]  ;;  %v2995_v16 = vld [vmem:[%s4402_s5 + $0x28] sm:$0xff] }
  0x1b   :  { %157 = vmatpush1.msra.mxu0 %v58_v51  ;;  %270 = vmatpush1.msra.mxu1 %v60_v52  ;;  %4442 = vst [vmem:[#allocation7_spill] sm:$0xff] %v2985_v14  ;;  %4443 = vst [vmem:[#allocation8_spill] sm:$0xff] %v2990_v15  ;;  %v3000_v17 = vld [vmem:[%s4402_s5 + $0x30] sm:$0xff]  ;;  %v3005_v18 = vld [vmem:[%s4402_s5 + $0x38] sm:$0xff] }
  0x1c   :  { %158 = vmatprep.subr.mxu0 %v55_v53  ;;  %271 = vmatprep.subr.mxu1 %v57_v54  ;;  %4444 = vst [vmem:[#allocation9_spill] sm:$0xff] %v2995_v16  ;;  %4445 = vst [vmem:[#allocation10_spill] sm:$0xff] %v3000_v17  ;;  %v3010_v19 = vld [vmem:[%s4402_s5 + $0x40] sm:$0xff]  ;;  %v3015_v20 = vld [vmem:[%s4402_s5 + $0x48] sm:$0xff] }
  0x1d   :  { %159 = vmatpush1.msra.mxu0 %v54_v55  ;;  %272 = vmatpush1.msra.mxu1 %v56_v56  ;;  %4446 = vst [vmem:[#allocation11_spill] sm:$0xff] %v3005_v18  ;;  %4447 = vst [vmem:[#allocation12_spill] sm:$0xff] %v3010_v19  ;;  %v3020_v21 = vld [vmem:[%s4402_s5 + $0x50] sm:$0xff]  ;;  %v3025_v22 = vld [vmem:[%s4402_s5 + $0x58] sm:$0xff] }
  0x1e   :  { %160 = vmatprep.subr.mxu0 %v51_v57  ;;  %273 = vmatprep.subr.mxu1 %v53_v58  ;;  %4448 = vst [vmem:[#allocation13_spill] sm:$0xff] %v3015_v20  ;;  %4449 = vst [vmem:[#allocation14_spill] sm:$0xff] %v3020_v21  ;;  %v3030_v23 = vld [vmem:[%s4402_s5 + $0x60] sm:$0xff]  ;;  %v3035_v24 = vld [vmem:[%s4402_s5 + $0x68] sm:$0xff] }
  0x1f   :  { %161 = vmatpush1.msra.mxu0 %v50_v59  ;;  %274 = vmatpush1.msra.mxu1 %v52_v60  ;;  %4450 = vst [vmem:[#allocation15_spill] sm:$0xff] %v3025_v22  ;;  %4451 = vst [vmem:[#allocation16_spill] sm:$0xff] %v3030_v23  ;;  %v3040_v25 = vld [vmem:[%s4402_s5 + $0x70] sm:$0xff]  ;;  %v3045_v26 = vld [vmem:[%s4402_s5 + $0x78] sm:$0xff] }
  0x20   :  { %162 = vmatprep.subr.mxu0 %v47_v61  ;;  %275 = vmatprep.subr.mxu1 %v49_v62  ;;  %4452 = vst [vmem:[#allocation17_spill] sm:$0xff] %v3035_v24  ;;  %4453 = vst [vmem:[#allocation18_spill] sm:$0xff] %v3040_v25  ;;  %v3050_v27 = vld [vmem:[%s4402_s5 + $0x80] sm:$0xff]  ;;  %v3055_v28 = vld [vmem:[%s4402_s5 + $0x88] sm:$0xff] }
  0x21   :  { %163 = vmatpush1.msra.mxu0 %v46_v63  ;;  %276 = vmatpush1.msra.mxu1 %v48_v0  ;;  %4454 = vst [vmem:[#allocation19_spill] sm:$0xff] %v3045_v26  ;;  %4455 = vst [vmem:[#allocation20_spill] sm:$0xff] %v3050_v27  ;;  %v3060_v29 = vld [vmem:[%s4402_s5 + $0x90] sm:$0xff]  ;;  %v3065_v30 = vld [vmem:[%s4402_s5 + $0x98] sm:$0xff] }
  0x22   :  { %197 = vmatmul.mubr.f32.vlgmr.msra.gmra.mxu0 %v38_v1  ;;  %310 = vmatmul.mubr.f32.vlgmr.msra.gmra.mxu1 %v38_v1  ;;  %4456 = vst [vmem:[#allocation21_spill] sm:$0xff] %v3055_v28  ;;  %4457 = vst [vmem:[#allocation22_spill] sm:$0xff] %v3060_v29  ;;  %v3070_v31 = vld [vmem:[%s4402_s5 + $0xa0] sm:$0xff]  ;;  %v3075_v32 = vld [vmem:[%s4402_s5 + $0xa8] sm:$0xff] }
  0x23   :  { %202 = vmatprep.mubr.f32.mxu0 %v2667_v3  ;;  %315 = vmatprep.mubr.f32.mxu1 %v2667_v3  ;;  %4458 = vst [vmem:[#allocation23_spill] sm:$0xff] %v3065_v30  ;;  %4459 = vst [vmem:[#allocation24_spill] sm:$0xff] %v3070_v31  ;;  %v3080_v33 = vld [vmem:[%s4402_s5 + $0xb0] sm:$0xff]  ;;  %v3085_v34 = vld [vmem:[%s4402_s5 + $0xb8] sm:$0xff] }
  0x24   :  { %4460 = vst [vmem:[#allocation25_spill] sm:$0xff] %v3075_v32  ;;  %4461 = vst [vmem:[#allocation26_spill] sm:$0xff] %v3080_v33  ;;  %v3090_v35 = vld [vmem:[%s4402_s5 + $0xc0] sm:$0xff]  ;;  %v3095_v36 = vld [vmem:[%s4402_s5 + $0xc8] sm:$0xff] }
  0x25   :  { %4462 = vst [vmem:[#allocation27_spill] sm:$0xff] %v3085_v34  ;;  %4463 = vst [vmem:[#allocation28_spill] sm:$0xff] %v3090_v35  ;;  %v3100_v37 = vld [vmem:[%s4402_s5 + $0xd0] sm:$0xff]  ;;  %v3105_v38 = vld [vmem:[%s4402_s5 + $0xd8] sm:$0xff] }
  0x26   :  { %203 = vmatmul.mubr.f32.gmra.mxu0 %v39_v2  ;;  %316 = vmatmul.mubr.f32.gmra.mxu1 %v39_v2  ;;  %4464 = vst [vmem:[#allocation29_spill] sm:$0xff] %v3095_v36  ;;  %4465 = vst [vmem:[#allocation30_spill] sm:$0xff] %v3100_v37  ;;  %v3110_v39 = vld [vmem:[%s4402_s5 + $0xe0] sm:$0xff]  ;;  %v3115_v40 = vld [vmem:[%s4402_s5 + $0xe8] sm:$0xff] }
  0x27   :  { %208 = vmatprep.mubr.f32.mxu0 %v2667_v3  ;;  %321 = vmatprep.mubr.f32.mxu1 %v2667_v3  ;;  %v3120_v41 = vld [vmem:[%s4402_s5 + $0xf0] sm:$0xff]  ;;  %v3125_v42 = vld [vmem:[%s4402_s5 + $0xf8] sm:$0xff]  ;;  %v3130_v43 = vld [vmem:[%s4402_s5 + $0x100] sm:$0xff] }
  0x28   :  { %v3135_v44 = vld [vmem:[%s4402_s5 + $0x108] sm:$0xff]  ;;  %v3140_v45 = vld [vmem:[%s4402_s5 + $0x110] sm:$0xff]  ;;  %v3145_v46 = vld [vmem:[%s4402_s5 + $0x118] sm:$0xff] }
  0x29   :  { %v3150_v47 = vld [vmem:[%s4402_s5 + $0x120] sm:$0xff]  ;;  %v3155_v48 = vld [vmem:[%s4402_s5 + $0x128] sm:$0xff]  ;;  %v3160_v49 = vld [vmem:[%s4402_s5 + $0x130] sm:$0xff] }
  0x2a   :  { %209 = vmatmul.mubr.f32.gmra.mxu0 %v40_v4  ;;  %322 = vmatmul.mubr.f32.gmra.mxu1 %v40_v4  ;;  %v3165_v50 = vld [vmem:[%s4402_s5 + $0x138] sm:$0xff]  ;;  %v3170_v51 = vld [vmem:[%s4402_s5 + $0x140] sm:$0xff]  ;;  %v3175_v52 = vld [vmem:[%s4402_s5 + $0x148] sm:$0xff] }
  0x2b   :  { %214 = vmatprep.mubr.f32.mxu0 %v2667_v3  ;;  %327 = vmatprep.mubr.f32.mxu1 %v2667_v3  ;;  %v3180_v53 = vld [vmem:[%s4402_s5 + $0x150] sm:$0xff]  ;;  %v3185_v54 = vld [vmem:[%s4402_s5 + $0x158] sm:$0xff]  ;;  %v3190_v55 = vld [vmem:[%s4402_s5 + $0x160] sm:$0xff] }
  0x2c   :  { %v3195_v56 = vld [vmem:[%s4402_s5 + $0x168] sm:$0xff]  ;;  %v3200_v57 = vld [vmem:[%s4402_s5 + $0x170] sm:$0xff]  ;;  %v3205_v58 = vld [vmem:[%s4402_s5 + $0x178] sm:$0xff] }
  0x2d   :  { %v3210_v59 = vld [vmem:[%s4402_s5 + $0x180] sm:$0xff]  ;;  %v3215_v60 = vld [vmem:[%s4402_s5 + $0x188] sm:$0xff]  ;;  %v3220_v61 = vld [vmem:[%s4402_s5 + $0x190] sm:$0xff] }
  0x2e   :  { %215 = vmatmul.mubr.f32.gmra.mxu0 %v41_v5  ;;  %328 = vmatmul.mubr.f32.gmra.mxu1 %v41_v5  ;;  %v3225_v62 = vld [vmem:[%s4402_s5 + $0x198] sm:$0xff]  ;;  %v3230_v63 = vld [vmem:[%s4402_s5 + $0x1a0] sm:$0xff]  ;;  %v3235_v0 = vld [vmem:[%s4402_s5 + $0x1a8] sm:$0xff] }
  0x2f   :  { %220 = vmatprep.mubr.f32.mxu0 %v2667_v3  ;;  %333 = vmatprep.mubr.f32.mxu1 %v2667_v3  ;;  %4466 = vst [vmem:[#allocation31_spill] sm:$0xff] %v3235_v0  ;;  %v3240_v1 = vld [vmem:[%s4402_s5 + $0x1b0] sm:$0xff]  ;;  %v3245_v2 = vld [vmem:[%s4402_s5 + $0x1b8] sm:$0xff]  ;;  %v3250_v4 = vld [vmem:[%s4402_s5 + $0x1c0] sm:$0xff] }
  0x30   :  { %4467 = vst [vmem:[#allocation32_spill] sm:$0xff] %v3240_v1  ;;  %4468 = vst [vmem:[#allocation33_spill] sm:$0xff] %v3245_v2  ;;  %v3255_v5 = vld [vmem:[%s4402_s5 + $0x1c8] sm:$0xff]  ;;  %v3280_v10 = vld [vmem:[%s4402_s5 + $0x1f0] sm:$0xff] }
  0x31   :  { %4469 = vst [vmem:[#allocation34_spill] sm:$0xff] %v3250_v4  ;;  %4470 = vst [vmem:[#allocation35_spill] sm:$0xff] %v3255_v5  ;;  %v3285_v11 = vld [vmem:[%s4402_s5 + $0x1f8] sm:$0xff]  ;;  %v3290_v13 = vld [vmem:[%s4402_s5 + $0x200] sm:$0xff] }
  0x32   :  { %221 = vmatmul.mubr.f32.gmra.mxu0 %v42_v6  ;;  %334 = vmatmul.mubr.f32.gmra.mxu1 %v42_v6  ;;  %v3260_v6 = vld [vmem:[%s4402_s5 + $0x1d0] sm:$0xff]  ;;  %4475 = vst [vmem:[#allocation40_spill] sm:$0xff] %v3280_v10  ;;  %4476 = vst [vmem:[#allocation41_spill] sm:$0xff] %v3285_v11  ;;  %v3295_v12 = vld [vmem:[%s4402_s5 + $0x208] sm:$0xff] }
  0x33   :  { %226 = vmatprep.mubr.f32.mxu0 %v2667_v3  ;;  %339 = vmatprep.mubr.f32.mxu1 %v2667_v3  ;;  %4471 = vst [vmem:[#allocation36_spill] sm:$0xff] %v3260_v6  ;;  %4477 = vst [vmem:[#allocation42_spill] sm:$0xff] %v3290_v13  ;;  %v3300_v14 = vld [vmem:[%s4402_s5 + $0x210] sm:$0xff]  ;;  %v3310_v17 = vld [vmem:[%s4402_s5 + $0x220] sm:$0xff] }
  0x34   :  { %4478 = vst [vmem:[#allocation43_spill] sm:$0xff] %v3295_v12  ;;  %4479 = vst [vmem:[#allocation44_spill] sm:$0xff] %v3300_v14  ;;  %v3315_v13 = vld [vmem:[%s4402_s5 + $0x228] sm:$0xff]  ;;  %v3320_v12 = vld [vmem:[%s4402_s5 + $0x230] sm:$0xff] }
  0x35   :  { %4481 = vst [vmem:[#allocation46_spill] sm:$0xff] %v3310_v17  ;;  %4482 = vst [vmem:[#allocation47_spill] sm:$0xff] %v3315_v13  ;;  %v3325_v14 = vld [vmem:[%s4402_s5 + $0x238] sm:$0xff]  ;;  %v3335_v17 = vld [vmem:[%s4402_s5 + $0x248] sm:$0xff] }
  0x36   :  { %227 = vmatmul.mubr.f32.gmra.mxu0 %v43_v7  ;;  %340 = vmatmul.mubr.f32.gmra.mxu1 %v43_v7  ;;  %v3265_v7 = vld [vmem:[%s4402_s5 + $0x1d8] sm:$0xff]  ;;  %4483 = vst [vmem:[#allocation48_spill] sm:$0xff] %v3320_v12  ;;  %4484 = vst [vmem:[#allocation49_spill] sm:$0xff] %v3325_v14  ;;  %v3340_v13 = vld [vmem:[%s4402_s5 + $0x250] sm:$0xff] }
  0x37   :  { %232 = vmatprep.mubr.f32.mxu0 %v2667_v3  ;;  %345 = vmatprep.mubr.f32.mxu1 %v2667_v3  ;;  %4472 = vst [vmem:[#allocation37_spill] sm:$0xff] %v3265_v7  ;;  %4486 = vst [vmem:[#allocation51_spill] sm:$0xff] %v3335_v17  ;;  %v3345_v12 = vld [vmem:[%s4402_s5 + $0x258] sm:$0xff]  ;;  %v3350_v14 = vld [vmem:[%s4402_s5 + $0x260] sm:$0xff] }
  0x38   :  { %4487 = vst [vmem:[#allocation52_spill] sm:$0xff] %v3340_v13  ;;  %4488 = vst [vmem:[#allocation53_spill] sm:$0xff] %v3345_v12  ;;  %v3360_v17 = vld [vmem:[%s4402_s5 + $0x270] sm:$0xff]  ;;  %v3365_v13 = vld [vmem:[%s4402_s5 + $0x278] sm:$0xff] }
  0x39   :  { %4489 = vst [vmem:[#allocation54_spill] sm:$0xff] %v3350_v14  ;;  %4491 = vst [vmem:[#allocation56_spill] sm:$0xff] %v3360_v17  ;;  %v3370_v12 = vld [vmem:[%s4402_s5 + $0x280] sm:$0xff]  ;;  %v3375_v14 = vld [vmem:[%s4402_s5 + $0x288] sm:$0xff] }
  0x3a   :  { %233 = vmatmul.mubr.f32.gmra.mxu0 %v44_v8  ;;  %346 = vmatmul.mubr.f32.gmra.mxu1 %v44_v8  ;;  %v3270_v8 = vld [vmem:[%s4402_s5 + $0x1e0] sm:$0xff]  ;;  %4492 = vst [vmem:[#allocation57_spill] sm:$0xff] %v3365_v13  ;;  %4493 = vst [vmem:[#allocation58_spill] sm:$0xff] %v3370_v12  ;;  %v3385_v17 = vld [vmem:[%s4402_s5 + $0x298] sm:$0xff] }
  0x3b   :  { %238 = vmatprep.mubr.f32.mxu0 %v2667_v3  ;;  %351 = vmatprep.mubr.f32.mxu1 %v2667_v3  ;;  %v2975_v3 = vld [vmem:[%s4402_s5 + $0x8] sm:$0xff]  ;;  %4473 = vst [vmem:[#allocation38_spill] sm:$0xff] %v3270_v8  ;;  %4494 = vst [vmem:[#allocation59_spill] sm:$0xff] %v3375_v14  ;;  %v3390_v13 = vld [vmem:[%s4402_s5 + $0x2a0] sm:$0xff] }
  0x3c   :  { %4440 = vst [vmem:[#allocation5_spill] sm:$0xff] %v2975_v3  ;;  %v3305_v3 = vld [vmem:[%s4402_s5 + $0x218] sm:$0xff]  ;;  %4496 = vst [vmem:[#allocation61_spill] sm:$0xff] %v3385_v17  ;;  %v3395_v12 = vld [vmem:[%s4402_s5 + $0x2a8] sm:$0xff] }
  0x3d   :  { %4480 = vst [vmem:[#allocation45_spill] sm:$0xff] %v3305_v3  ;;  %v3330_v3 = vld [vmem:[%s4402_s5 + $0x240] sm:$0xff]  ;;  %4497 = vst [vmem:[#allocation62_spill] sm:$0xff] %v3390_v13  ;;  %v3400_v14 = vld [vmem:[%s4402_s5 + $0x2b0] sm:$0xff] }
  0x3e   :  { %239 = vmatmul.mubr.f32.gmra.mxu0 %v45_v9  ;;  %352 = vmatmul.mubr.f32.gmra.mxu1 %v45_v9  ;;  %v3275_v9 = vld [vmem:[%s4402_s5 + $0x1e8] sm:$0xff]  ;;  %4485 = vst [vmem:[#allocation50_spill] sm:$0xff] %v3330_v3  ;;  %4498 = vst [vmem:[#allocation63_spill] sm:$0xff] %v3395_v12  ;;  %v3410_v17 = vld [vmem:[%s4402_s5 + $0x2c0] sm:$0xff] }
  0x3f   :  { %4474 = vst [vmem:[#allocation39_spill] sm:$0xff] %v3275_v9  ;;  %v3355_v3 = vld [vmem:[%s4402_s5 + $0x268] sm:$0xff]  ;;  %4499 = vst [vmem:[#allocation64_spill] sm:$0xff] %v3400_v14  ;;  %v3420_v12 = vld [vmem:[%s4402_s5 + $0x2d0] sm:$0xff] }
  0x40   :  { %4490 = vst [vmem:[#allocation55_spill] sm:$0xff] %v3355_v3  ;;  %v3380_v3 = vld [vmem:[%s4402_s5 + $0x290] sm:$0xff]  ;;  %4501 = vst [vmem:[#allocation66_spill] sm:$0xff] %v3410_v17  ;;  %v3415_v13 = vld [vmem:[%s4402_s5 + $0x2c8] sm:$0xff] }
  0x41   :  { %4495 = vst [vmem:[#allocation60_spill] sm:$0xff] %v3380_v3  ;;  %v3405_v3 = vld [vmem:[%s4402_s5 + $0x2b8] sm:$0xff]  ;;  %4502 = vst [vmem:[#allocation67_spill] sm:$0xff] %v3415_v13  ;;  %v3435_v17 = vld [vmem:[%s4402_s5 + $0x2e8] sm:$0xff] }
  0x42   :  { %4500 = vst [vmem:[#allocation65_spill] sm:$0xff] %v3405_v3  ;;  %4503 = vst [vmem:[#allocation68_spill] sm:$0xff] %v3420_v12  ;;  %v3425_v14 = vld [vmem:[%s4402_s5 + $0x2d8] sm:$0xff]  ;;  %v3430_v3 = vld [vmem:[%s4402_s5 + $0x2e0] sm:$0xff] }
  0x43   :  { %4504 = vst [vmem:[#allocation69_spill] sm:$0xff] %v3425_v14  ;;  %4505 = vst [vmem:[#allocation70_spill] sm:$0xff] %v3430_v3  ;;  %v3440_v13 = vld [vmem:[%s4402_s5 + $0x2f0] sm:$0xff]  ;;  %v3445_v12 = vld [vmem:[%s4402_s5 + $0x2f8] sm:$0xff] }
  0x44   :  { %4506 = vst [vmem:[#allocation71_spill] sm:$0xff] %v3435_v17  ;;  %4507 = vst [vmem:[#allocation72_spill] sm:$0xff] %v3440_v13  ;;  %v3450_v14 = vld [vmem:[%s4402_s5 + $0x300] sm:$0xff]  ;;  %v3455_v3 = vld [vmem:[%s4402_s5 + $0x308] sm:$0xff] }
  0x45   :  { %4508 = vst [vmem:[#allocation73_spill] sm:$0xff] %v3445_v12  ;;  %4509 = vst [vmem:[#allocation74_spill] sm:$0xff] %v3450_v14  ;;  %v3460_v17 = vld [vmem:[%s4402_s5 + $0x310] sm:$0xff]  ;;  %v3465_v13 = vld [vmem:[%s4402_s5 + $0x318] sm:$0xff] }
  0x46   :  { %4510 = vst [vmem:[#allocation75_spill] sm:$0xff] %v3455_v3  ;;  %4511 = vst [vmem:[#allocation76_spill] sm:$0xff] %v3460_v17  ;;  %v3470_v12 = vld [vmem:[%s4402_s5 + $0x320] sm:$0xff]  ;;  %v3475_v14 = vld [vmem:[%s4402_s5 + $0x328] sm:$0xff] }
  0x47   :  { %4512 = vst [vmem:[#allocation77_spill] sm:$0xff] %v3465_v13  ;;  %4513 = vst [vmem:[#allocation78_spill] sm:$0xff] %v3470_v12  ;;  %v3480_v3 = vld [vmem:[%s4402_s5 + $0x330] sm:$0xff]  ;;  %v3485_v17 = vld [vmem:[%s4402_s5 + $0x338] sm:$0xff] }
  0x48   :  { %4514 = vst [vmem:[#allocation79_spill] sm:$0xff] %v3475_v14  ;;  %4515 = vst [vmem:[#allocation80_spill] sm:$0xff] %v3480_v3  ;;  %v3490_v13 = vld [vmem:[%s4402_s5 + $0x340] sm:$0xff]  ;;  %v3495_v12 = vld [vmem:[%s4402_s5 + $0x348] sm:$0xff] }
  0x49   :  { %4516 = vst [vmem:[#allocation81_spill] sm:$0xff] %v3485_v17  ;;  %4517 = vst [vmem:[#allocation82_spill] sm:$0xff] %v3490_v13  ;;  %v3500_v14 = vld [vmem:[%s4402_s5 + $0x350] sm:$0xff]  ;;  %v3505_v3 = vld [vmem:[%s4402_s5 + $0x358] sm:$0xff] }
  0x4a   :  { %4518 = vst [vmem:[#allocation83_spill] sm:$0xff] %v3495_v12  ;;  %4519 = vst [vmem:[#allocation84_spill] sm:$0xff] %v3500_v14  ;;  %v3510_v17 = vld [vmem:[%s4402_s5 + $0x360] sm:$0xff]  ;;  %v3515_v13 = vld [vmem:[%s4402_s5 + $0x368] sm:$0xff] }
  0x4b   :  { %4520 = vst [vmem:[#allocation85_spill] sm:$0xff] %v3505_v3  ;;  %4521 = vst [vmem:[#allocation86_spill] sm:$0xff] %v3510_v17  ;;  %v3520_v12 = vld [vmem:[%s4402_s5 + $0x370] sm:$0xff]  ;;  %v3525_v14 = vld [vmem:[%s4402_s5 + $0x378] sm:$0xff] }
  0x4c   :  { %4522 = vst [vmem:[#allocation87_spill] sm:$0xff] %v3515_v13  ;;  %4523 = vst [vmem:[#allocation88_spill] sm:$0xff] %v3520_v12  ;;  %v3530_v3 = vld [vmem:[%s4402_s5 + $0x380] sm:$0xff]  ;;  %v3535_v17 = vld [vmem:[%s4402_s5 + $0x388] sm:$0xff] }
  0x4d   :  { %4524 = vst [vmem:[#allocation89_spill] sm:$0xff] %v3525_v14  ;;  %4525 = vst [vmem:[#allocation90_spill] sm:$0xff] %v3530_v3  ;;  %v3540_v13 = vld [vmem:[%s4402_s5 + $0x390] sm:$0xff]  ;;  %v3545_v12 = vld [vmem:[%s4402_s5 + $0x398] sm:$0xff] }
  0x4e   :  { %4526 = vst [vmem:[#allocation91_spill] sm:$0xff] %v3535_v17  ;;  %4527 = vst [vmem:[#allocation92_spill] sm:$0xff] %v3540_v13  ;;  %v3550_v14 = vld [vmem:[%s4402_s5 + $0x3a0] sm:$0xff]  ;;  %v3555_v3 = vld [vmem:[%s4402_s5 + $0x3a8] sm:$0xff] }
  0x4f   :  { %4528 = vst [vmem:[#allocation93_spill] sm:$0xff] %v3545_v12  ;;  %4529 = vst [vmem:[#allocation94_spill] sm:$0xff] %v3550_v14  ;;  %v3560_v17 = vld [vmem:[%s4402_s5 + $0x3b0] sm:$0xff]  ;;  %v3565_v13 = vld [vmem:[%s4402_s5 + $0x3b8] sm:$0xff] }
  0x50   :  { %4530 = vst [vmem:[#allocation95_spill] sm:$0xff] %v3555_v3  ;;  %4531 = vst [vmem:[#allocation96_spill] sm:$0xff] %v3560_v17  ;;  %v3570_v12 = vld [vmem:[%s4402_s5 + $0x3c0] sm:$0xff]  ;;  %v3575_v14 = vld [vmem:[%s4402_s5 + $0x3c8] sm:$0xff] }
  0x51   :  { %4532 = vst [vmem:[#allocation97_spill] sm:$0xff] %v3565_v13  ;;  %4533 = vst [vmem:[#allocation98_spill] sm:$0xff] %v3570_v12  ;;  %v3580_v3 = vld [vmem:[%s4402_s5 + $0x3d0] sm:$0xff]  ;;  %v3585_v17 = vld [vmem:[%s4402_s5 + $0x3d8] sm:$0xff] }
  0x52   :  { %4534 = vst [vmem:[#allocation99_spill] sm:$0xff] %v3575_v14  ;;  %4535 = vst [vmem:[#allocation100_spill] sm:$0xff] %v3580_v3  ;;  %v3590_v13 = vld [vmem:[%s4402_s5 + $0x3e0] sm:$0xff]  ;;  %v3595_v12 = vld [vmem:[%s4402_s5 + $0x3e8] sm:$0xff] }
  0x53   :  { %4536 = vst [vmem:[#allocation101_spill] sm:$0xff] %v3585_v17  ;;  %4537 = vst [vmem:[#allocation102_spill] sm:$0xff] %v3590_v13  ;;  %v3600_v14 = vld [vmem:[%s4402_s5 + $0x3f0] sm:$0xff]  ;;  %v3605_v3 = vld [vmem:[%s4402_s5 + $0x3f8] sm:$0xff] }
  0x54   :  { %4538 = vst [vmem:[#allocation103_spill] sm:$0xff] %v3595_v12  ;;  %4539 = vst [vmem:[#allocation104_spill] sm:$0xff] %v3600_v14  ;;  %v3610_v17 = vld [vmem:[%s4403_s7] sm:$0xff]  ;;  %v3615_v13 = vld [vmem:[%s4403_s7 + $0x8] sm:$0xff] }
  0x55   :  { %4540 = vst [vmem:[#allocation105_spill] sm:$0xff] %v3605_v3  ;;  %4541 = vst [vmem:[#allocation106_spill] sm:$0xff] %v3610_v17  ;;  %v3620_v12 = vld [vmem:[%s4403_s7 + $0x10] sm:$0xff]  ;;  %v3625_v14 = vld [vmem:[%s4403_s7 + $0x18] sm:$0xff] }
  0x56   :  { %4542 = vst [vmem:[#allocation107_spill] sm:$0xff] %v3615_v13  ;;  %4543 = vst [vmem:[#allocation108_spill] sm:$0xff] %v3620_v12  ;;  %v3630_v3 = vld [vmem:[%s4403_s7 + $0x20] sm:$0xff]  ;;  %v3635_v17 = vld [vmem:[%s4403_s7 + $0x28] sm:$0xff] }
  0x57   :  { %4544 = vst [vmem:[#allocation109_spill] sm:$0xff] %v3625_v14  ;;  %4545 = vst [vmem:[#allocation110_spill] sm:$0xff] %v3630_v3  ;;  %v3640_v13 = vld [vmem:[%s4403_s7 + $0x30] sm:$0xff]  ;;  %v3645_v12 = vld [vmem:[%s4403_s7 + $0x38] sm:$0xff] }
  0x58   :  { %4546 = vst [vmem:[#allocation111_spill] sm:$0xff] %v3635_v17  ;;  %4547 = vst [vmem:[#allocation112_spill] sm:$0xff] %v3640_v13  ;;  %v3650_v14 = vld [vmem:[%s4403_s7 + $0x40] sm:$0xff]  ;;  %v3655_v3 = vld [vmem:[%s4403_s7 + $0x48] sm:$0xff] }
  0x59   :  { %4548 = vst [vmem:[#allocation113_spill] sm:$0xff] %v3645_v12  ;;  %4549 = vst [vmem:[#allocation114_spill] sm:$0xff] %v3650_v14  ;;  %v3660_v17 = vld [vmem:[%s4403_s7 + $0x50] sm:$0xff]  ;;  %v3665_v13 = vld [vmem:[%s4403_s7 + $0x58] sm:$0xff] }
  0x5a   :  { %4550 = vst [vmem:[#allocation115_spill] sm:$0xff] %v3655_v3  ;;  %4551 = vst [vmem:[#allocation116_spill] sm:$0xff] %v3660_v17  ;;  %v3670_v12 = vld [vmem:[%s4403_s7 + $0x60] sm:$0xff]  ;;  %v3675_v14 = vld [vmem:[%s4403_s7 + $0x68] sm:$0xff] }
  0x5b   :  { %4552 = vst [vmem:[#allocation117_spill] sm:$0xff] %v3665_v13  ;;  %4553 = vst [vmem:[#allocation118_spill] sm:$0xff] %v3670_v12  ;;  %v3680_v3 = vld [vmem:[%s4403_s7 + $0x70] sm:$0xff]  ;;  %v3685_v17 = vld [vmem:[%s4403_s7 + $0x78] sm:$0xff] }
  0x5c   :  { %4554 = vst [vmem:[#allocation119_spill] sm:$0xff] %v3675_v14  ;;  %4555 = vst [vmem:[#allocation120_spill] sm:$0xff] %v3680_v3  ;;  %v3690_v13 = vld [vmem:[%s4404_s8] ss:$0 sm:$0xff]  ;;  %v3700_v14 = vld [vmem:[%s4405_s9 + $0x8] sm:$0xff] }
  0x5d   :  { %4556 = vst [vmem:[#allocation121_spill] sm:$0xff] %v3685_v17  ;;  %4557 = vst [vmem:[#allocation122_spill] sm:$0xff] %v3690_v13  ;;  %v3695_v12 = vld [vmem:[%s4405_s9] sm:$0xff]  ;;  %v3705_v3 = vld [vmem:[%s4405_s9 + $0x10] sm:$0xff] }
  0x5e   :  { %4558 = vst [vmem:[#allocation123_spill] sm:$0xff] %v3695_v12  ;;  %4559 = vst [vmem:[#allocation124_spill] sm:$0xff] %v3700_v14  ;;  %v3710_v17 = vld [vmem:[%s4405_s9 + $0x18] sm:$0xff]  ;;  %v3715_v13 = vld [vmem:[%s4405_s9 + $0x20] sm:$0xff] }
  0x5f   :  { %4560 = vst [vmem:[#allocation125_spill] sm:$0xff] %v3705_v3  ;;  %4561 = vst [vmem:[#allocation126_spill] sm:$0xff] %v3710_v17  ;;  %v3720_v12 = vld [vmem:[%s4405_s9 + $0x28] sm:$0xff]  ;;  %v3725_v14 = vld [vmem:[%s4405_s9 + $0x30] sm:$0xff] }
  0x60   :  { %4562 = vst [vmem:[#allocation127_spill] sm:$0xff] %v3715_v13  ;;  %4563 = vst [vmem:[#allocation128_spill] sm:$0xff] %v3720_v12  ;;  %v3730_v3 = vld [vmem:[%s4405_s9 + $0x38] sm:$0xff]  ;;  %v3735_v17 = vld [vmem:[%s4405_s9 + $0x40] sm:$0xff] }
  0x61   :  { %4564 = vst [vmem:[#allocation129_spill] sm:$0xff] %v3725_v14  ;;  %4565 = vst [vmem:[#allocation130_spill] sm:$0xff] %v3730_v3  ;;  %v3740_v13 = vld [vmem:[%s4405_s9 + $0x48] sm:$0xff]  ;;  %v3745_v12 = vld [vmem:[%s4405_s9 + $0x50] sm:$0xff] }
  0x62   :  { %4566 = vst [vmem:[#allocation131_spill] sm:$0xff] %v3735_v17  ;;  %4567 = vst [vmem:[#allocation132_spill] sm:$0xff] %v3740_v13  ;;  %v3750_v14 = vld [vmem:[%s4405_s9 + $0x58] sm:$0xff]  ;;  %v3755_v3 = vld [vmem:[%s4405_s9 + $0x60] sm:$0xff] }
  0x63   :  { %4568 = vst [vmem:[#allocation133_spill] sm:$0xff] %v3745_v12  ;;  %4569 = vst [vmem:[#allocation134_spill] sm:$0xff] %v3750_v14  ;;  %v3760_v17 = vld [vmem:[%s4405_s9 + $0x68] sm:$0xff]  ;;  %v3765_v13 = vld [vmem:[%s4405_s9 + $0x70] sm:$0xff] }
  0x64   :  { %4570 = vst [vmem:[#allocation135_spill] sm:$0xff] %v3755_v3  ;;  %4571 = vst [vmem:[#allocation136_spill] sm:$0xff] %v3760_v17  ;;  %v3770_v12 = vld [vmem:[%s4405_s9 + $0x78] sm:$0xff]  ;;  %v3775_v14 = vld [vmem:[%s4405_s9 + $0x80] sm:$0xff] }
  0x65   :  { %4572 = vst [vmem:[#allocation137_spill] sm:$0xff] %v3765_v13  ;;  %4573 = vst [vmem:[#allocation138_spill] sm:$0xff] %v3770_v12  ;;  %v3780_v3 = vld [vmem:[%s4405_s9 + $0x88] sm:$0xff]  ;;  %v3785_v17 = vld [vmem:[%s4405_s9 + $0x90] sm:$0xff] }
  0x66   :  { %4574 = vst [vmem:[#allocation139_spill] sm:$0xff] %v3775_v14  ;;  %4575 = vst [vmem:[#allocation140_spill] sm:$0xff] %v3780_v3  ;;  %v3790_v13 = vld [vmem:[%s4405_s9 + $0x98] sm:$0xff]  ;;  %v3795_v12 = vld [vmem:[%s4405_s9 + $0xa0] sm:$0xff] }
  0x67   :  { %4576 = vst [vmem:[#allocation141_spill] sm:$0xff] %v3785_v17  ;;  %4577 = vst [vmem:[#allocation142_spill] sm:$0xff] %v3790_v13  ;;  %v3800_v14 = vld [vmem:[%s4405_s9 + $0xa8] sm:$0xff]  ;;  %v3805_v3 = vld [vmem:[%s4405_s9 + $0xb0] sm:$0xff] }
  0x68   :  { %4578 = vst [vmem:[#allocation143_spill] sm:$0xff] %v3795_v12  ;;  %4579 = vst [vmem:[#allocation144_spill] sm:$0xff] %v3800_v14  ;;  %v3810_v17 = vld [vmem:[%s4405_s9 + $0xb8] sm:$0xff]  ;;  %v3815_v13 = vld [vmem:[%s4405_s9 + $0xc0] sm:$0xff] }
  0x69   :  { %4580 = vst [vmem:[#allocation145_spill] sm:$0xff] %v3805_v3  ;;  %4581 = vst [vmem:[#allocation146_spill] sm:$0xff] %v3810_v17  ;;  %v3820_v12 = vld [vmem:[%s4405_s9 + $0xc8] sm:$0xff]  ;;  %v3825_v14 = vld [vmem:[%s4405_s9 + $0xd0] sm:$0xff] }
  0x6a   :  { %4582 = vst [vmem:[#allocation147_spill] sm:$0xff] %v3815_v13  ;;  %4583 = vst [vmem:[#allocation148_spill] sm:$0xff] %v3820_v12  ;;  %v3830_v3 = vld [vmem:[%s4405_s9 + $0xd8] sm:$0xff]  ;;  %v3835_v17 = vld [vmem:[%s4405_s9 + $0xe0] sm:$0xff] }
  0x6b   :  { %4584 = vst [vmem:[#allocation149_spill] sm:$0xff] %v3825_v14  ;;  %4585 = vst [vmem:[#allocation150_spill] sm:$0xff] %v3830_v3  ;;  %v3840_v13 = vld [vmem:[%s4405_s9 + $0xe8] sm:$0xff]  ;;  %v3845_v12 = vld [vmem:[%s4405_s9 + $0xf0] sm:$0xff] }
  0x6c   :  { %4586 = vst [vmem:[#allocation151_spill] sm:$0xff] %v3835_v17  ;;  %4587 = vst [vmem:[#allocation152_spill] sm:$0xff] %v3840_v13  ;;  %v3850_v14 = vld [vmem:[%s4405_s9 + $0xf8] sm:$0xff]  ;;  %v3855_v3 = vld [vmem:[%s4407_s10] ss:$0 sm:$0xff] }
  0x6d   :  { %4588 = vst [vmem:[#allocation153_spill] sm:$0xff] %v3845_v12  ;;  %4589 = vst [vmem:[#allocation154_spill] sm:$0xff] %v3850_v14  ;;  %v3860_v17 = vld [vmem:[%s4406_s3] sm:$0xff]  ;;  %v3865_v13 = vld [vmem:[%s4406_s3 + $0x8] sm:$0xff] }
  0x6e   :  { %4590 = vst [vmem:[#allocation155_spill] sm:$0xff] %v3855_v3  ;;  %4591 = vst [vmem:[#allocation156_spill] sm:$0xff] %v3860_v17  ;;  %v3870_v12 = vld [vmem:[%s4406_s3 + $0x10] sm:$0xff]  ;;  %v3875_v14 = vld [vmem:[%s4406_s3 + $0x18] sm:$0xff] }
  0x6f   :  { %4592 = vst [vmem:[#allocation157_spill] sm:$0xff] %v3865_v13  ;;  %4593 = vst [vmem:[#allocation158_spill] sm:$0xff] %v3870_v12  ;;  %v3880_v3 = vld [vmem:[%s4406_s3 + $0x20] sm:$0xff]  ;;  %v3885_v17 = vld [vmem:[%s4406_s3 + $0x28] sm:$0xff] }
  0x70   :  { %4594 = vst [vmem:[#allocation159_spill] sm:$0xff] %v3875_v14  ;;  %4595 = vst [vmem:[#allocation160_spill] sm:$0xff] %v3880_v3  ;;  %v3890_v13 = vld [vmem:[%s4406_s3 + $0x30] sm:$0xff]  ;;  %v3895_v12 = vld [vmem:[%s4406_s3 + $0x38] sm:$0xff] }
  0x71   :  { %4596 = vst [vmem:[#allocation161_spill] sm:$0xff] %v3885_v17  ;;  %4597 = vst [vmem:[#allocation162_spill] sm:$0xff] %v3890_v13  ;;  %v3900_v14 = vld [vmem:[%s4406_s3 + $0x40] sm:$0xff]  ;;  %v3905_v3 = vld [vmem:[%s4406_s3 + $0x48] sm:$0xff] }
  0x72   :  { %4598 = vst [vmem:[#allocation163_spill] sm:$0xff] %v3895_v12  ;;  %4599 = vst [vmem:[#allocation164_spill] sm:$0xff] %v3900_v14  ;;  %v3910_v17 = vld [vmem:[%s4406_s3 + $0x50] sm:$0xff]  ;;  %v3915_v13 = vld [vmem:[%s4406_s3 + $0x58] sm:$0xff] }
  0x73   :  { %4600 = vst [vmem:[#allocation165_spill] sm:$0xff] %v3905_v3  ;;  %4601 = vst [vmem:[#allocation166_spill] sm:$0xff] %v3910_v17  ;;  %v3920_v12 = vld [vmem:[%s4406_s3 + $0x60] sm:$0xff]  ;;  %v3925_v14 = vld [vmem:[%s4406_s3 + $0x68] sm:$0xff] }
  0x74   :  { %4602 = vst [vmem:[#allocation167_spill] sm:$0xff] %v3915_v13  ;;  %4603 = vst [vmem:[#allocation168_spill] sm:$0xff] %v3920_v12  ;;  %v3930_v3 = vld [vmem:[%s4406_s3 + $0x70] sm:$0xff]  ;;  %v3935_v17 = vld [vmem:[%s4406_s3 + $0x78] sm:$0xff] }
  0x75   :  { %4604 = vst [vmem:[#allocation169_spill] sm:$0xff] %v3925_v14  ;;  %4605 = vst [vmem:[#allocation170_spill] sm:$0xff] %v3930_v3  ;;  %v3940_v13 = vld [vmem:[%s4408_s1] sm:$0xff]   ;;  %v4607_v14 = vlaneseq  ;;  %s4005_s1 = smov 0  }
  0x76   :  { %4606 = vst [vmem:[#allocation171_spill] sm:$0xff] %v3935_v17  ;;  %v3945_v12 = vld [vmem:[%s4409_s2] sm:$0xff]  }
  0x77   :  { %v3948_v15 = vshrl.u32 %v4607_v14, 7  ;;  %v110_v17 = vld [vmem:[%s4410_s6] sm:$0xf] }
  0x79   :  { %4608 = vst [vmem:[#allocation172_spill] sm:$0xff] %v3948_v15  ;;  %v114_v3 = vsub.s32 0, %v3948_v15  ;;  %v122_v18 = vsub.s32 2, %v3948_v15  ;;  %v118_v16 = vsub.s32 1, %v3948_v15  ;;  %v126_v21 = vsub.s32 3, %v3948_v15 }
  0x7b   :  { %v3957_v19 = vrot.slane %v110_v17, %v114_v3  ;;  %v3959_v22 = vrot.slane %v110_v17, %v122_v18  ;;  %v3961_v20 = vrot.slane %v110_v17, %v118_v16  ;;  %v3963_v14 = vrot.slane %v110_v17, %v126_v21 }
  0xe2   :  { %v198_v25 = vpop.f32.mrf.mxu0  ;;  %v311_v23 = vpop.f32.mrf.mxu1 }
  0xe3   :  { %v199_v26 = vadd.f32 %v198_v25, %v3957_v19  ;;  %v312_v24 = vadd.f32 %v311_v23, %v3959_v22 }
  0xe4   :  { %v200_v29 = vpop.f32.mrf.mxu0  ;;  %v313_v27 = vpop.f32.mrf.mxu1 }
  0xe5   :  { %358 = vst [vmem:[#allocation2] sm:$0xff] %v199_v26  ;;  %360 = vst [vmem:[#allocation2 + $0x10] sm:$0xff] %v312_v24  ;;  %v201_v15 = vadd.f32 %v200_v29, %v3961_v20  ;;  %v314_v3 = vadd.f32 %v313_v27, %v3963_v14 }
  0xe6   :  { %v204_v18 = vpop.f32.mrf.mxu0  ;;  %v317_v30 = vpop.f32.mrf.mxu1 }
  0xe7   :  { %359 = vst [vmem:[#allocation2 + $0x8] sm:$0xff] %v201_v15  ;;  %361 = vst [vmem:[#allocation2 + $0x18] sm:$0xff] %v314_v3  ;;  %v205_v16 = vadd.f32 %v204_v18, %v3957_v19  ;;  %v318_v17 = vadd.f32 %v317_v30, %v3959_v22 }
  0xe8   :  { %v206_v21 = vpop.f32.mrf.mxu0  ;;  %v319_v25 = vpop.f32.mrf.mxu1 }
  0xe9   :  { %362 = vst [vmem:[#allocation2 + $0x20] sm:$0xff] %v205_v16  ;;  %364 = vst [vmem:[#allocation2 + $0x30] sm:$0xff] %v318_v17  ;;  %v207_v23 = vadd.f32 %v206_v21, %v3961_v20  ;;  %v320_v24 = vadd.f32 %v319_v25, %v3963_v14 }
  0xea   :  { %v210_v26 = vpop.f32.mrf.mxu0  ;;  %v323_v29 = vpop.f32.mrf.mxu1 }
  0xeb   :  { %363 = vst [vmem:[#allocation2 + $0x28] sm:$0xff] %v207_v23  ;;  %365 = vst [vmem:[#allocation2 + $0x38] sm:$0xff] %v320_v24  ;;  %v211_v27 = vadd.f32 %v210_v26, %v3957_v19  ;;  %v324_v15 = vadd.f32 %v323_v29, %v3959_v22 }
  0xec   :  { %v212_v3 = vpop.f32.mrf.mxu0  ;;  %v325_v18 = vpop.f32.mrf.mxu1 }
  0xed   :  { %366 = vst [vmem:[#allocation2 + $0x40] sm:$0xff] %v211_v27  ;;  %368 = vst [vmem:[#allocation2 + $0x50] sm:$0xff] %v324_v15  ;;  %v213_v30 = vadd.f32 %v212_v3, %v3961_v20  ;;  %v326_v16 = vadd.f32 %v325_v18, %v3963_v14 }
  0xee   :  { %v216_v17 = vpop.f32.mrf.mxu0  ;;  %v329_v21 = vpop.f32.mrf.mxu1 }
  0xef   :  { %367 = vst [vmem:[#allocation2 + $0x48] sm:$0xff] %v213_v30  ;;  %369 = vst [vmem:[#allocation2 + $0x58] sm:$0xff] %v326_v16  ;;  %v217_v25 = vadd.f32 %v216_v17, %v3957_v19  ;;  %v330_v23 = vadd.f32 %v329_v21, %v3959_v22 }
  0xf0   :  { %v218_v24 = vpop.f32.mrf.mxu0  ;;  %v331_v26 = vpop.f32.mrf.mxu1 }
  0xf1   :  { %370 = vst [vmem:[#allocation2 + $0x60] sm:$0xff] %v217_v25  ;;  %372 = vst [vmem:[#allocation2 + $0x70] sm:$0xff] %v330_v23  ;;  %v219_v29 = vadd.f32 %v218_v24, %v3961_v20  ;;  %v332_v27 = vadd.f32 %v331_v26, %v3963_v14 }
  0xf2   :  { %v222_v15 = vpop.f32.mrf.mxu0  ;;  %v335_v3 = vpop.f32.mrf.mxu1 }
  0xf3   :  { %371 = vst [vmem:[#allocation2 + $0x68] sm:$0xff] %v219_v29  ;;  %373 = vst [vmem:[#allocation2 + $0x78] sm:$0xff] %v332_v27  ;;  %v223_v18 = vadd.f32 %v222_v15, %v3957_v19  ;;  %v336_v30 = vadd.f32 %v335_v3, %v3959_v22 }
  0xf4   :  { %v224_v16 = vpop.f32.mrf.mxu0  ;;  %v337_v17 = vpop.f32.mrf.mxu1 }
  0xf5   :  { %374 = vst [vmem:[#allocation2 + $0x80] sm:$0xff] %v223_v18  ;;  %376 = vst [vmem:[#allocation2 + $0x90] sm:$0xff] %v336_v30  ;;  %v225_v21 = vadd.f32 %v224_v16, %v3961_v20  ;;  %v338_v25 = vadd.f32 %v337_v17, %v3963_v14 }
  0xf6   :  { %v228_v23 = vpop.f32.mrf.mxu0  ;;  %v341_v24 = vpop.f32.mrf.mxu1 }
  0xf7   :  { %375 = vst [vmem:[#allocation2 + $0x88] sm:$0xff] %v225_v21  ;;  %377 = vst [vmem:[#allocation2 + $0x98] sm:$0xff] %v338_v25  ;;  %v229_v26 = vadd.f32 %v228_v23, %v3957_v19  ;;  %v342_v29 = vadd.f32 %v341_v24, %v3959_v22 }
  0xf8   :  { %v230_v27 = vpop.f32.mrf.mxu0  ;;  %v343_v15 = vpop.f32.mrf.mxu1 }
  0xf9   :  { %378 = vst [vmem:[#allocation2 + $0xa0] sm:$0xff] %v229_v26  ;;  %380 = vst [vmem:[#allocation2 + $0xb0] sm:$0xff] %v342_v29  ;;  %v231_v3 = vadd.f32 %v230_v27, %v3961_v20  ;;  %v344_v18 = vadd.f32 %v343_v15, %v3963_v14 }
  0xfa   :  { %v234_v30 = vpop.f32.mrf.mxu0  ;;  %v347_v16 = vpop.f32.mrf.mxu1 }
  0xfb   :  { %379 = vst [vmem:[#allocation2 + $0xa8] sm:$0xff] %v231_v3  ;;  %381 = vst [vmem:[#allocation2 + $0xb8] sm:$0xff] %v344_v18  ;;  %v235_v17 = vadd.f32 %v234_v30, %v3957_v19  ;;  %v348_v21 = vadd.f32 %v347_v16, %v3959_v22 }
  0xfc   :  { %v236_v25 = vpop.f32.mrf.mxu0  ;;  %v349_v23 = vpop.f32.mrf.mxu1 }
  0xfd   :  { %382 = vst [vmem:[#allocation2 + $0xc0] sm:$0xff] %v235_v17  ;;  %384 = vst [vmem:[#allocation2 + $0xd0] sm:$0xff] %v348_v21  ;;  %v237_v24 = vadd.f32 %v236_v25, %v3961_v20  ;;  %v350_v26 = vadd.f32 %v349_v23, %v3963_v14  ;;  %v3997_v21 = vmov 0.0  }
  0xfe   :  { %v240_v29 = vpop.f32.mrf.mxu0  ;;  %v353_v27 = vpop.f32.mrf.mxu1 }
  0xff   :  { %383 = vst [vmem:[#allocation2 + $0xc8] sm:$0xff] %v237_v24  ;;  %385 = vst [vmem:[#allocation2 + $0xd8] sm:$0xff] %v350_v26  ;;  %v241_v15 = vadd.f32 %v240_v29, %v3957_v19  ;;  %v354_v3 = vadd.f32 %v353_v27, %v3959_v22 }
 0x100   :  { %v242_v18 = vpop.f32.mrf.mxu0  ;;  %v355_v30 = vpop.f32.mrf.mxu1 }
 0x101   :  { %386 = vst [vmem:[#allocation2 + $0xe0] sm:$0xff] %v241_v15  ;;  %388 = vst [vmem:[#allocation2 + $0xf0] sm:$0xff] %v354_v3  ;;  %v243_v16 = vadd.f32 %v242_v18, %v3961_v20  ;;  %v356_v17 = vadd.f32 %v355_v30, %v3963_v14 }
 0x103   :  { %387 = vst [vmem:[#allocation2 + $0xe8] sm:$0xff] %v243_v16  ;;  %389 = vst [vmem:[#allocation2 + $0xf8] sm:$0xff] %v356_v17 }
 0x104 LB: > { %v4609_v9 = vld [vmem:[#allocation39_spill] sm:$0xff]  ;;  %v4610_v11 = vld [vmem:[#allocation41_spill] sm:$0xff]  ;;  %v4611_v8 = vld [vmem:[#allocation38_spill] sm:$0xff]  ;;  %672 = vmatprep.mubr.f32.mxu0 %v2661_v13  ;;  %743 = vmatprep.mubr.f32.mxu1 %v2661_v13  ;;  %vm2669_vm1 = vmmov 0   ;;  %s2285_s2 = sshll.u32 %s2665_s1, 3  ;;  %vm1480_vm2 = vcmask 122880   ;;  %s2665_s1 = sphi %s4005_s1, %s594_s1   ;;  %v2661_v13 = vphi %v3940_v13, %v4200_v13   ;;  %v2657_v12 = vphi %v3945_v12, %v4197_v12   ;;  %v2653_v21 = vphi %v3997_v21, %v2634_v21  }
 0x105   : > { %608 = vmatprep.subr.mxu0 %v4609_v9  ;;  %679 = vmatprep.subr.mxu1 %v4610_v11  ;;  %v4612_v10 = vld [vmem:[#allocation40_spill] sm:$0xff]  ;;  %v4613_v5 = vld [vmem:[#allocation35_spill] sm:$0xff]  ;;  %v4614_v7 = vld [vmem:[#allocation37_spill] sm:$0xff]  ;;  %s599_s6 = sshra.s32 %s2285_s2, 3  ;;  %vm1569_vm3 = vcmask 130048   ;;  %vm2163_vm4 = vcmask 1041409   ;;  %s2261_s27 = scalar_lea.vmem %s4400_s11, %s2285_s2 }
 0x106   : > { %609 = vmatpush1.msra.mxu0 %v4611_v8  ;;  %680 = vmatpush1.msra.mxu1 %v4612_v10  ;;  %v4615_v4 = vld [vmem:[#allocation34_spill] sm:$0xff]  ;;  %v4616_v6 = vld [vmem:[#allocation36_spill] sm:$0xff]  ;;  %v4617_v0 = vld [vmem:[#allocation31_spill] sm:$0xff]  ;;  %s2301_s24 = sshll.u32 %s599_s6, 5  ;;  %vm2166_vm5 = vcmask 1042434   ;;  %vm2169_vm6 = vcmask 1043459  }
 0x107   : > { %610 = vmatprep.subr.mxu0 %v4613_v5  ;;  %681 = vmatprep.subr.mxu1 %v4614_v7  ;;  %v4618_v2 = vld [vmem:[#allocation33_spill] sm:$0xff]  ;;  %v4619_v1 = vld [vmem:[#allocation32_spill] sm:$0xff]  ;;  %v4622_v37 = vld [vmem:[#allocation30_spill] sm:$0xff]  ;;  %s603_s25 = scalar_lea.vmem [#allocation2], %s2301_s24  ;;  %vm2172_vm7 = vcmask 1044484   ;;  %vm2175_vm8 = vcmask 1045509  }
 0x108   : > { %611 = vmatpush1.msra.mxu0 %v4615_v4  ;;  %682 = vmatpush1.msra.mxu1 %v4616_v6  ;;  %v4620_v36 = vld [vmem:[#allocation29_spill] sm:$0xff]  ;;  %v4621_v35 = vld [vmem:[#allocation28_spill] sm:$0xff]  ;;  %v4624_v34 = vld [vmem:[#allocation27_spill] sm:$0xff]  ;;  %vm2178_vm9 = vcmask 1046534   ;;  %vm2181_vm10 = vcmask 1047559   ;;  %s594_s1 = sadd.s32 1, %s2665_s1  }
 0x109   : > { %612 = vmatprep.subr.mxu0 %v4617_v0  ;;  %683 = vmatprep.subr.mxu1 %v4618_v2  ;;  %v4623_v32 = vld [vmem:[#allocation25_spill] sm:$0xff]  ;;  %v4625_v31 = vld [vmem:[#allocation24_spill] sm:$0xff]  ;;  %v4626_v33 = vld [vmem:[#allocation26_spill] sm:$0xff]  ;;  %p591_p0 = scmp.ge.s32.totalorder %s594_s1, 8  }
 0x10a   : > { %613 = vmatpush1.msra.mxu0 %v3230_v63  ;;  %684 = vmatpush1.msra.mxu1 %v4619_v1  ;;  %v4627_v28 = vld [vmem:[#allocation21_spill] sm:$0xff]  ;;  %v4628_v19 = vld [vmem:[#allocation23_spill] sm:$0xff]  ;;  %v4629_v20 = vld [vmem:[#allocation20_spill] sm:$0xff] }
 0x10b   : > { %614 = vmatprep.subr.mxu0 %v3215_v60  ;;  %685 = vmatprep.subr.mxu1 %v3225_v62  ;;  %v4630_v22 = vld [vmem:[#allocation22_spill] sm:$0xff]  ;;  %v4631_v14 = vld [vmem:[#allocation17_spill] sm:$0xff]  ;;  %v4632_v25 = vld [vmem:[#allocation19_spill] sm:$0xff] }
 0x10c   : > { %615 = vmatpush1.msra.mxu0 %v3210_v59  ;;  %686 = vmatpush1.msra.mxu1 %v3220_v61  ;;  %v4633_v23 = vld [vmem:[#allocation16_spill] sm:$0xff]  ;;  %v4634_v24 = vld [vmem:[#allocation18_spill] sm:$0xff]  ;;  %v4635_v26 = vld [vmem:[#allocation13_spill] sm:$0xff] }
 0x10d   : > { %616 = vmatprep.subr.mxu0 %v3195_v56  ;;  %687 = vmatprep.subr.mxu1 %v3205_v58  ;;  %v4636_v29 = vld [vmem:[#allocation15_spill] sm:$0xff]  ;;  %v4637_v27 = vld [vmem:[#allocation12_spill] sm:$0xff]  ;;  %v4638_v15 = vld [vmem:[#allocation14_spill] sm:$0xff] }
 0x10e   : > { %617 = vmatpush1.msra.mxu0 %v3190_v55  ;;  %688 = vmatpush1.msra.mxu1 %v3200_v57  ;;  %v4639_v3 = vld [vmem:[#allocation9_spill] sm:$0xff]  ;;  %v4640_v18 = vld [vmem:[#allocation11_spill] sm:$0xff]  ;;  %v4641_v30 = vld [vmem:[#allocation8_spill] sm:$0xff] }
 0x10f   : > { %618 = vmatprep.subr.mxu0 %v3175_v52  ;;  %689 = vmatprep.subr.mxu1 %v3185_v54  ;;  %v4642_v16 = vld [vmem:[#allocation10_spill] sm:$0xff]  ;;  %v4643_v17 = vld [vmem:[#allocation5_spill] sm:$0xff]  ;;  %v4714_v13 = vld [vmem:[#allocation119_spill] sm:$0xff] }
 0x110   : > { %619 = vmatpush1.msra.mxu0 %v3170_v51  ;;  %690 = vmatpush1.msra.mxu1 %v3180_v53  ;;  %v4744_v2 = vld [vmem:[#allocation168_spill] sm:$0xff] }
 0x111   : > { %620 = vmatprep.subr.mxu0 %v3155_v48  ;;  %691 = vmatprep.subr.mxu1 %v3165_v50 }
 0x112   : > { %621 = vmatpush1.msra.mxu0 %v3150_v47  ;;  %692 = vmatpush1.msra.mxu1 %v3160_v49 }
 0x113   : > { %622 = vmatprep.subr.mxu0 %v3135_v44  ;;  %693 = vmatprep.subr.mxu1 %v3145_v46 }
 0x114   : > { %623 = vmatpush1.msra.mxu0 %v3130_v43  ;;  %694 = vmatpush1.msra.mxu1 %v3140_v45 }
 0x115   : > { %624 = vmatprep.subr.mxu0 %v3115_v40  ;;  %695 = vmatprep.subr.mxu1 %v3125_v42 }
 0x116   : > { %625 = vmatpush1.msra.mxu0 %v3110_v39  ;;  %696 = vmatpush1.msra.mxu1 %v3120_v41 }
 0x117   : > { %626 = vmatprep.subr.mxu0 %v4620_v36  ;;  %697 = vmatprep.subr.mxu1 %v3105_v38 }
 0x118   : > { %627 = vmatpush1.msra.mxu0 %v4621_v35  ;;  %698 = vmatpush1.msra.mxu1 %v4622_v37 }
 0x119   : > { %628 = vmatprep.subr.mxu0 %v4623_v32  ;;  %699 = vmatprep.subr.mxu1 %v4624_v34 }
 0x11a   : > { %629 = vmatpush1.msra.mxu0 %v4625_v31  ;;  %700 = vmatpush1.msra.mxu1 %v4626_v33 }
 0x11b   : > { %630 = vmatprep.subr.mxu0 %v4627_v28  ;;  %701 = vmatprep.subr.mxu1 %v4628_v19  ;;  %v4644_v19 = vld [vmem:[#allocation7_spill] sm:$0xff] }
 0x11c   : > { %631 = vmatpush1.msra.mxu0 %v4629_v20  ;;  %702 = vmatpush1.msra.mxu1 %v4630_v22  ;;  %v4645_v20 = vld [vmem:[#allocation4_spill] sm:$0xff]  ;;  %v4646_v22 = vld [vmem:[#allocation6_spill] sm:$0xff] }
 0x11d   : > { %632 = vmatprep.subr.mxu0 %v4631_v14  ;;  %703 = vmatprep.subr.mxu1 %v4632_v25  ;;  %v4647_v14 = vld [vmem:[#allocation103_spill] sm:$0xff]  ;;  %v4648_v25 = vld [vmem:[#allocation105_spill] sm:$0xff] }
 0x11e   : > { %633 = vmatpush1.msra.mxu0 %v4633_v23  ;;  %704 = vmatpush1.msra.mxu1 %v4634_v24  ;;  %v4649_v23 = vld [vmem:[#allocation102_spill] sm:$0xff]  ;;  %v4650_v24 = vld [vmem:[#allocation104_spill] sm:$0xff] }
 0x11f   : > { %634 = vmatprep.subr.mxu0 %v4635_v26  ;;  %705 = vmatprep.subr.mxu1 %v4636_v29  ;;  %v4651_v26 = vld [vmem:[#allocation99_spill] sm:$0xff]  ;;  %v4652_v29 = vld [vmem:[#allocation101_spill] sm:$0xff] }
 0x120   : > { %635 = vmatpush1.msra.mxu0 %v4637_v27  ;;  %706 = vmatpush1.msra.mxu1 %v4638_v15  ;;  %v4653_v27 = vld [vmem:[#allocation98_spill] sm:$0xff]  ;;  %v4654_v15 = vld [vmem:[#allocation100_spill] sm:$0xff] }
 0x121   : > { %636 = vmatprep.subr.mxu0 %v4639_v3  ;;  %707 = vmatprep.subr.mxu1 %v4640_v18  ;;  %v4655_v3 = vld [vmem:[#allocation95_spill] sm:$0xff]  ;;  %v4656_v18 = vld [vmem:[#allocation97_spill] sm:$0xff] }
 0x122   : > { %637 = vmatpush1.msra.mxu0 %v4641_v30  ;;  %708 = vmatpush1.msra.mxu1 %v4642_v16  ;;  %v4657_v30 = vld [vmem:[#allocation94_spill] sm:$0xff]  ;;  %v4658_v16 = vld [vmem:[#allocation96_spill] sm:$0xff] }
 0x123   : > { %638 = vmatprep.subr.mxu0 %v4643_v17  ;;  %709 = vmatprep.subr.mxu1 %v4644_v19  ;;  %v4659_v17 = vld [vmem:[#allocation91_spill] sm:$0xff]  ;;  %v4660_v19 = vld [vmem:[#allocation93_spill] sm:$0xff] }
 0x124   : > { %639 = vmatpush1.msra.mxu0 %v4645_v20  ;;  %710 = vmatpush1.msra.mxu1 %v4646_v22  ;;  %v4661_v20 = vld [vmem:[#allocation90_spill] sm:$0xff]  ;;  %v4662_v22 = vld [vmem:[#allocation92_spill] sm:$0xff] }
 0x125   : > { %640 = vmatprep.subr.mxu0 %v4647_v14  ;;  %711 = vmatprep.subr.mxu1 %v4648_v25  ;;  %v4663_v14 = vld [vmem:[#allocation87_spill] sm:$0xff]  ;;  %v4664_v25 = vld [vmem:[#allocation89_spill] sm:$0xff] }
 0x126   : > { %641 = vmatpush2.msra.mxu0 %v4649_v23  ;;  %712 = vmatpush2.msra.mxu1 %v4650_v24  ;;  %v4665_v23 = vld [vmem:[#allocation86_spill] sm:$0xff]  ;;  %v4666_v24 = vld [vmem:[#allocation88_spill] sm:$0xff] }
 0x127   : > { %642 = vmatprep.subr.mxu0 %v4651_v26  ;;  %713 = vmatprep.subr.mxu1 %v4652_v29  ;;  %v4667_v26 = vld [vmem:[#allocation83_spill] sm:$0xff]  ;;  %v4668_v29 = vld [vmem:[#allocation85_spill] sm:$0xff] }
 0x128   : > { %643 = vmatpush2.msra.mxu0 %v4653_v27  ;;  %714 = vmatpush2.msra.mxu1 %v4654_v15  ;;  %v4669_v27 = vld [vmem:[#allocation82_spill] sm:$0xff]  ;;  %v4670_v15 = vld [vmem:[#allocation84_spill] sm:$0xff] }
 0x129   : > { %644 = vmatprep.subr.mxu0 %v4655_v3  ;;  %715 = vmatprep.subr.mxu1 %v4656_v18  ;;  %v4671_v3 = vld [vmem:[#allocation79_spill] sm:$0xff]  ;;  %v4672_v18 = vld [vmem:[#allocation81_spill] sm:$0xff] }
 0x12a   : > { %645 = vmatpush2.msra.mxu0 %v4657_v30  ;;  %716 = vmatpush2.msra.mxu1 %v4658_v16  ;;  %v4673_v30 = vld [vmem:[#allocation78_spill] sm:$0xff]  ;;  %v4674_v16 = vld [vmem:[#allocation80_spill] sm:$0xff] }
 0x12b   : > { %646 = vmatprep.subr.mxu0 %v4659_v17  ;;  %717 = vmatprep.subr.mxu1 %v4660_v19  ;;  %v4675_v17 = vld [vmem:[#allocation75_spill] sm:$0xff]  ;;  %v4676_v19 = vld [vmem:[#allocation77_spill] sm:$0xff] }
 0x12c   : > { %647 = vmatpush2.msra.mxu0 %v4661_v20  ;;  %718 = vmatpush2.msra.mxu1 %v4662_v22  ;;  %v4677_v20 = vld [vmem:[#allocation74_spill] sm:$0xff]  ;;  %v4678_v22 = vld [vmem:[#allocation71_spill] sm:$0xff] }
 0x12d   : > { %648 = vmatprep.subr.mxu0 %v4663_v14  ;;  %719 = vmatprep.subr.mxu1 %v4664_v25  ;;  %v4679_v14 = vld [vmem:[#allocation76_spill] sm:$0xff]  ;;  %v4680_v25 = vld [vmem:[#allocation70_spill] sm:$0xff] }
 0x12e   : > { %649 = vmatpush2.msra.mxu0 %v4665_v23  ;;  %720 = vmatpush2.msra.mxu1 %v4666_v24  ;;  %v4681_v23 = vld [vmem:[#allocation73_spill] sm:$0xff]  ;;  %v4682_v24 = vld [vmem:[#allocation67_spill] sm:$0xff] }
 0x12f   : > { %650 = vmatprep.subr.mxu0 %v4667_v26  ;;  %721 = vmatprep.subr.mxu1 %v4668_v29  ;;  %v4683_v26 = vld [vmem:[#allocation72_spill] sm:$0xff]  ;;  %v4684_v29 = vld [vmem:[#allocation66_spill] sm:$0xff] }
 0x130   : > { %651 = vmatpush2.msra.mxu0 %v4669_v27  ;;  %722 = vmatpush2.msra.mxu1 %v4670_v15  ;;  %v4685_v27 = vld [vmem:[#allocation69_spill] sm:$0xff]  ;;  %v4686_v15 = vld [vmem:[#allocation63_spill] sm:$0xff] }
 0x131   : > { %652 = vmatprep.subr.mxu0 %v4671_v3  ;;  %723 = vmatprep.subr.mxu1 %v4672_v18  ;;  %v4687_v3 = vld [vmem:[#allocation68_spill] sm:$0xff]  ;;  %v4688_v18 = vld [vmem:[#allocation62_spill] sm:$0xff] }
 0x132   : > { %653 = vmatpush2.msra.mxu0 %v4673_v30  ;;  %724 = vmatpush2.msra.mxu1 %v4674_v16  ;;  %v4689_v30 = vld [vmem:[#allocation65_spill] sm:$0xff]  ;;  %v4690_v16 = vld [vmem:[#allocation59_spill] sm:$0xff] }
 0x133   : > { %654 = vmatprep.subr.mxu0 %v4675_v17  ;;  %725 = vmatprep.subr.mxu1 %v4676_v19  ;;  %v4691_v17 = vld [vmem:[#allocation64_spill] sm:$0xff]  ;;  %v4692_v19 = vld [vmem:[#allocation58_spill] sm:$0xff] }
 0x134   : > { %655 = vmatpush2.msra.mxu0 %v4677_v20  ;;  %726 = vmatpush2.msra.mxu1 %v4679_v14  ;;  %v4693_v20 = vld [vmem:[#allocation61_spill] sm:$0xff]  ;;  %v4695_v14 = vld [vmem:[#allocation60_spill] sm:$0xff] }
 0x135   : > { %656 = vmatprep.subr.mxu0 %v4678_v22  ;;  %727 = vmatprep.subr.mxu1 %v4681_v23  ;;  %v4694_v22 = vld [vmem:[#allocation55_spill] sm:$0xff]  ;;  %v4697_v23 = vld [vmem:[#allocation57_spill] sm:$0xff] }
 0x136   : > { %657 = vmatpush2.msra.mxu0 %v4680_v25  ;;  %728 = vmatpush2.msra.mxu1 %v4683_v26  ;;  %v4696_v25 = vld [vmem:[#allocation54_spill] sm:$0xff]  ;;  %v4699_v26 = vld [vmem:[#allocation56_spill] sm:$0xff] }
 0x137   : > { %658 = vmatprep.subr.mxu0 %v4682_v24  ;;  %729 = vmatprep.subr.mxu1 %v4685_v27  ;;  %v4698_v24 = vld [vmem:[#allocation51_spill] sm:$0xff]  ;;  %v4701_v27 = vld [vmem:[#allocation53_spill] sm:$0xff] }
 0x138   : > { %659 = vmatpush2.msra.mxu0 %v4684_v29  ;;  %730 = vmatpush2.msra.mxu1 %v4687_v3  ;;  %v4700_v29 = vld [vmem:[#allocation50_spill] sm:$0xff]  ;;  %v4703_v3 = vld [vmem:[#allocation52_spill] sm:$0xff] }
 0x139   : > { %660 = vmatprep.subr.mxu0 %v4686_v15  ;;  %731 = vmatprep.subr.mxu1 %v4689_v30  ;;  %v4702_v15 = vld [vmem:[#allocation47_spill] sm:$0xff]  ;;  %v4705_v30 = vld [vmem:[#allocation49_spill] sm:$0xff] }
 0x13a   : > { %661 = vmatpush2.msra.mxu0 %v4688_v18  ;;  %732 = vmatpush2.msra.mxu1 %v4691_v17  ;;  %v4704_v18 = vld [vmem:[#allocation46_spill] sm:$0xff]  ;;  %v4707_v17 = vld [vmem:[#allocation48_spill] sm:$0xff] }
 0x13b   : > { %662 = vmatprep.subr.mxu0 %v4690_v16  ;;  %733 = vmatprep.subr.mxu1 %v4693_v20  ;;  %v4706_v16 = vld [vmem:[#allocation43_spill] sm:$0xff]  ;;  %v4709_v20 = vld [vmem:[#allocation45_spill] sm:$0xff] }
 0x13c   : > { %663 = vmatpush2.msra.mxu0 %v4692_v19  ;;  %734 = vmatpush2.msra.mxu1 %v4695_v14  ;;  %v4708_v19 = vld [vmem:[#allocation42_spill] sm:$0xff]  ;;  %v4431_v14 = vmov 0.0  }
 0x13d   : > { %664 = vmatprep.subr.mxu0 %v4694_v22  ;;  %735 = vmatprep.subr.mxu1 %v4697_v23  ;;  %v4710_v22 = vld [vmem:[#allocation44_spill] sm:$0xff]  ;;  %v4712_v23 = vld [vmem:[#allocation157_spill] sm:$0xff] }
 0x13e   : > { %665 = vmatpush2.msra.mxu0 %v4696_v25  ;;  %736 = vmatpush2.msra.mxu1 %v4699_v26  ;;  %v4711_v25 = vld [vmem:[#allocation121_spill] sm:$0xff] }
 0x13f   : > { %666 = vmatprep.subr.mxu0 %v4698_v24  ;;  %737 = vmatprep.subr.mxu1 %v4701_v27  ;;  %v4713_v24 = vld [vmem:[#allocation120_spill] sm:$0xff]  ;;  %v4718_v27 = vld [vmem:[#allocation117_spill] sm:$0xff] }
 0x140   : > { %667 = vmatpush2.msra.mxu0 %v4700_v29  ;;  %738 = vmatpush2.msra.mxu1 %v4703_v3  ;;  %v4717_v29 = vld [vmem:[#allocation118_spill] sm:$0xff]  ;;  %v4720_v3 = vld [vmem:[#allocation115_spill] sm:$0xff] }
 0x141   : > { %668 = vmatprep.subr.mxu0 %v4702_v15  ;;  %739 = vmatprep.subr.mxu1 %v4705_v30  ;;  %v4719_v15 = vld [vmem:[#allocation116_spill] sm:$0xff]  ;;  %v4722_v30 = vld [vmem:[#allocation113_spill] sm:$0xff] }
 0x142   : > { %669 = vmatpush2.msra.mxu0 %v4704_v18  ;;  %740 = vmatpush2.msra.mxu1 %v4707_v17  ;;  %v4721_v18 = vld [vmem:[#allocation114_spill] sm:$0xff]  ;;  %v4724_v17 = vld [vmem:[#allocation111_spill] sm:$0xff] }
 0x143   : > { %670 = vmatprep.subr.mxu0 %v4706_v16  ;;  %741 = vmatprep.subr.mxu1 %v4709_v20  ;;  %v4723_v16 = vld [vmem:[#allocation112_spill] sm:$0xff]  ;;  %v4726_v20 = vld [vmem:[#allocation109_spill] sm:$0xff] }
 0x144   : > { %671 = vmatpush2.msra.mxu0 %v4708_v19  ;;  %742 = vmatpush2.msra.mxu1 %v4710_v22  ;;  %v4725_v19 = vld [vmem:[#allocation110_spill] sm:$0xff]  ;;  %v4727_v22 = vld [vmem:[#allocation108_spill] sm:$0xff] }
 0x145   : > { %673 = vmatmul.mubr.f32.vlgmr.msra.gmra.mxu0 %v2653_v21  ;;  %744 = vmatmul.mubr.f32.vlgmr.msra.gmra.mxu1 %v2653_v21  ;;  %v4715_v21 = vld [vmem:[#allocation156_spill] sm:$0xff] }
 0x146   : > { %2402 = vmatprep.subr.mxu0 %v4431_v14  ;;  %2437 = vmatprep.subr.mxu1 %v4431_v14  ;;  %v4716_v26 = vmov %v4715_v21 }
 0x147   : > { %2403 = vmatpush3.msra.mxu0 %v4711_v25  ;;  %2438 = vmatpush3.xpose.msra.mxu1 %v4712_v23  ;;  %v4728_v25 = vld [vmem:[#allocation107_spill] sm:$0xff] }
 0x148   : > { %2404 = vmatprep.subr.mxu0 %v4431_v14  ;;  %2439 = vmatprep.subr.mxu1 %v4431_v14 }
 0x149   : > { %2405 = vmatpush3.msra.mxu0 %v4713_v24  ;;  %2434 = vmatprep.mubr.msk.f32.mxu0 %vm2669_vm1, %v4431_v14  ;;  %v4729_v24 = vld [vmem:[#allocation106_spill] sm:$0xff] }
 0x14a   : > { %2406 = vmatprep.subr.mxu0 %v4431_v14  ;;  %2441 = vmatprep.mubr.msk.f32.mxu1 %vm2669_vm1, %v4431_v14 }
 0x14b   : > { %2407 = vmatpush3.msra.mxu0 %v4714_v13  ;;  %2440 = vmatpush3.xpose.msra.mxu1 %v4715_v21  ;;  %v604_v13 = vld [vmem:[%s603_s25] sm:$0xff] }
 0x14c   : > { %2408 = vmatprep.subr.mxu0 %v4431_v14  ;;  %2444 = vmatprep.subr.mxu1 %v4431_v14 }
 0x14d   : > { %2409 = vmatpush3.msra.mxu0 %v4717_v29  ;;  %v605_v29 = vld [vmem:[%s603_s25 + $0x8] sm:$0xff] }
 0x14e   : > { %2410 = vmatprep.subr.mxu0 %v4431_v14 }
 0x14f   : > { %2411 = vmatpush3.msra.mxu0 %v4718_v27 }
 0x150   : > { %2412 = vmatprep.subr.mxu0 %v4431_v14 }
 0x151   : > { %2413 = vmatpush3.msra.mxu0 %v4719_v15 }
 0x152   : > { %2414 = vmatprep.subr.mxu0 %v4431_v14 }
 0x153   : > { %2415 = vmatpush3.msra.mxu0 %v4720_v3 }
 0x154   : > { %2416 = vmatprep.subr.mxu0 %v4431_v14 }
 0x155   : > { %2417 = vmatpush3.msra.mxu0 %v4721_v18 }
 0x156   : > { %2418 = vmatprep.subr.mxu0 %v4431_v14 }
 0x157   : > { %2419 = vmatpush3.msra.mxu0 %v4722_v30 }
 0x158   : > { %2420 = vmatprep.subr.mxu0 %v4431_v14 }
 0x159   : > { %2421 = vmatpush3.msra.mxu0 %v4723_v16 }
 0x15a   : > { %2422 = vmatprep.subr.mxu0 %v4431_v14 }
 0x15b   : > { %2423 = vmatpush3.msra.mxu0 %v4724_v17  ;;  %v607_v17 = vld [vmem:[%s603_s25 + $0x18] sm:$0xff] }
 0x15c   : > { %2424 = vmatprep.subr.mxu0 %v4431_v14 }
 0x15d   : > { %2425 = vmatpush3.msra.mxu0 %v4725_v19 }
 0x15e   : > { %2426 = vmatprep.subr.mxu0 %v4431_v14 }
 0x15f   : > { %2427 = vmatpush3.msra.mxu0 %v4726_v20  ;;  %v606_v20 = vld [vmem:[%s603_s25 + $0x10] sm:$0xff] }
 0x160   : > { %2428 = vmatprep.subr.mxu0 %v4431_v14 }
 0x161   : > { %2429 = vmatpush3.msra.mxu0 %v4727_v22 }
 0x162   : > { %2430 = vmatprep.subr.mxu0 %v4431_v14 }
 0x163   : > { %2431 = vmatpush3.msra.mxu0 %v4728_v25 }
 0x164   : > { %2432 = vmatprep.subr.mxu0 %v4431_v14 }
 0x165   : > { %2433 = vmatpush3.msra.mxu0 %v4729_v24 }
 0x166   : > { %2493 = vmatprep.subr.mxu0 %v4431_v14 }
 0x205   : > { %v674_v21 = vpop.f32.mrf.mxu0  ;;  %v745_v16 = vpop.f32.mrf.mxu1 }
 0x206   : > { %v750_v27 = vadd.f32 %v674_v21, %v604_v13  ;;  %v752_v25 = vadd.f32 %v745_v16, %v606_v20  ;;  %v4731_v20 = vld [vmem:[#allocation172_spill] sm:$0xff] }
 0x207   : > { %v676_v15 = vpop.f32.mrf.mxu0  ;;  %v747_v19 = vpop.f32.mrf.mxu1 }
 0x208   : > { %v2288_v3 = vmul.f32 -1.442695, %v750_v27  ;;  %v751_v18 = vadd.f32 %v676_v15, %v605_v29  ;;  %v753_v22 = vadd.f32 %v747_v19, %v607_v17 }
 0x20a   : > { %2585 = vpow2.f32 %v2288_v3  ;;  %v2289_v30 = vmul.f32 -1.442695, %v751_v18  ;;  %v2290_v24 = vmul.f32 -1.442695, %v753_v22 }
 0x20c   : > { %2587 = vpow2.f32 %v2289_v30 }
 0x20d   : > { %2589 = vtanh.f32 %v752_v25 }
 0x20e   : > { %2591 = vpow2.f32 %v2290_v24  ;;  %v4732_v24 = vld [vmem:[#allocation122_spill] sm:$0xff] }
 0x217   : > { %v2586_v14 = vpop.eup %2585 }
 0x218   : > { %v757_v0 = vadd.f32 1.0, %v2586_v14 }
 0x219   : > { %v2588_v1 = vpop.eup %2587 }
 0x21a   : > { %2593 = vrcp.f32 %v757_v0  ;;  %v763_v13 = vadd.f32 1.0, %v2588_v1  ;;  %v2590_v21 = vpop.eup %2589  ;;  %v4730_v0 = vmov 0.0   ;;  %v2670_v1 = vmov 1966171168  }
 0x21b   : > { %v2592_v29 = vpop.eup %2591  ;;  %v857_v17 = vunpack.c.l.s4 %v2670_v1  ;;  %v4736_v1 = vld [vmem:[#allocation160_spill] sm:$0xff] }
 0x21c   : > { %2595 = vrcp.f32 %v763_v13  ;;  %v770_v3 = vadd.f32 1.0, %v2592_v29 }
 0x21d   : > { %v858_v19 = vunpack.c.0.s8 %v857_v17 }
 0x21e   : > { %2597 = vrcp.f32 %v770_v3  ;;  %v4733_v3 = vld [vmem:[#allocation159_spill] sm:$0xff] }
 0x21f   : > { %v861_v22 = vsub.s32 %v858_v19, %v4731_v20  ;;  %v4737_v19 = vld [vmem:[#allocation163_spill] sm:$0xff]  ;;  %v4738_v20 = vld [vmem:[#allocation162_spill] sm:$0xff] }
 0x227   : > { %v2594_v27 = vpop.eup %2593 }
 0x228   : > { %v774_v30 = vmul.f32 %v2594_v27, %v2590_v21 }
 0x229   : > { %v2596_v15 = vpop.eup %2595 }
 0x22a   : > { %v773_v18 = vmul.f32 %v2657_v12, %v2596_v15 }
 0x22b   : > { %v2598_v14 = vpop.eup %2597 }
 0x22c   : > { %v4197_v12 = vadd.f32 %v774_v30, %v773_v18   ;;  %v4734_v30 = vld [vmem:[#allocation158_spill] sm:$0xff] }
 0x22e   : > { %2599 = vtanh.f32 %v4197_v12 }
 0x23b   : > { %v2600_v16 = vpop.eup %2599 }
 0x23c   : > { %v4200_v13 = vmul.f32 %v2600_v16, %v2598_v14   ;;  %v4735_v16 = vld [vmem:[#allocation161_spill] sm:$0xff] }
 0x23e   : > { %2435 = vmatmul.mubr.f32.vlgmr.msra.gmra.mxu0 %v4200_v13 }
 0x23f   : > { %2494 = vmatpush3.msra.mxu0 %v4712_v23  ;;  %2497 = vmatprep.mubr.msk.f32.mxu0 %vm2669_vm1, %v4730_v0 }
 0x240   : > { %2495 = vmatprep.subr.mxu0 %v4730_v0 }
 0x241   : > { %2496 = vmatpush3.msra.mxu0 %v4716_v26 }
 0x242   : > { %2507 = vmatprep.subr.mxu0 %v4730_v0 }
 0x2fe   : > { %v850_v25 = vpop.f32.mrf.mxu0 }
 0x2ff   : > { %v851_v21 = vadd.f32 %v4732_v24, %v850_v25 }
 0x300   : > { %v2436_v29 = vpop.f32.mrf.mxu0 }
 0x301   : > { %v862_v27 = vrot.slane %v851_v21, %v861_v22  ;;  %v855_v25 = vcombine.high %v851_v21, %v851_v21  ;;  %v4739_v29 = vld [vmem:[#allocation165_spill] sm:$0xff] }
 0x303   : > { %v878_v15 = vrot.slane %v862_v27, %v861_v22  ;;  %v870_v18 = vcombine.high %v862_v27, %v862_v27  ;;  %v869_v27 = vrot.slane %v855_v25, %v861_v22  ;;  %v4743_v25 = vld [vmem:[#allocation169_spill] sm:$0xff] }
 0x305   : > { %2442 = vmatmul.mubr.f32.vlgmr.msra.gmra.mxu1 %v878_v15  ;;  %v892_v14 = vrot.slane %v870_v18, %v861_v22  ;;  %v900_v17 = vcombine.high %v878_v15, %v878_v15  ;;  %v4740_v15 = vld [vmem:[#allocation164_spill] sm:$0xff]  ;;  %v885_v18 = vrot.slane %v869_v27, %v861_v22  ;;  %v871_v21 = vcombine.high %v869_v27, %v869_v27  ;;  %v4745_v27 = vld [vmem:[#allocation171_spill] sm:$0xff] }
 0x306   : > { %2445 = vmatpush3.xpose.msra.mxu1 %v4733_v3  ;;  %2448 = vmatprep.mubr.msk.f32.mxu1 %vm2669_vm1, %v4730_v0 }
 0x307   : > { %2446 = vmatprep.subr.mxu1 %v4730_v0  ;;  %v902_v24 = vcombine.high %v892_v14, %v892_v14  ;;  %v901_v4 = vcombine.high %v885_v18, %v885_v18 }
 0x30a   : > { %2447 = vmatpush3.xpose.msra.mxu1 %v4734_v30 }
 0x30b   : > { %2451 = vmatprep.subr.mxu1 %v4730_v0 }
 0x30d   : > { %2449 = vmatmul.mubr.f32.vlgmr.msra.gmra.mxu1 %v892_v14  ;;  %v4742_v14 = vld [vmem:[#allocation166_spill] sm:$0xff] }
 0x30e   : > { %2452 = vmatpush3.xpose.msra.mxu1 %v4735_v16  ;;  %2455 = vmatprep.mubr.msk.f32.mxu1 %vm2669_vm1, %v4730_v0 }
 0x30f   : > { %2453 = vmatprep.subr.mxu1 %v4730_v0 }
 0x312   : > { %2454 = vmatpush3.xpose.msra.mxu1 %v4736_v1 }
 0x313   : > { %2458 = vmatprep.subr.mxu1 %v4730_v0 }
 0x315   : > { %2456 = vmatmul.mubr.f32.vlgmr.msra.gmra.mxu1 %v900_v17  ;;  %v4741_v17 = vld [vmem:[#allocation167_spill] sm:$0xff] }
 0x316   : > { %2459 = vmatpush3.xpose.msra.mxu1 %v4737_v19  ;;  %2462 = vmatprep.mubr.msk.f32.mxu1 %vm2669_vm1, %v4730_v0 }
 0x317   : > { %2460 = vmatprep.subr.mxu1 %v4730_v0 }
 0x31a   : > { %2461 = vmatpush3.xpose.msra.mxu1 %v4738_v20 }
 0x31b   : > { %2465 = vmatprep.subr.mxu1 %v4730_v0 }
 0x31d   : > { %2463 = vmatmul.mubr.f32.vlgmr.msra.gmra.mxu1 %v902_v24  ;;  %v899_v24 = vrot.slane %v871_v21, %v861_v22  ;;  %v4746_v22 = vld [vmem:[#allocation170_spill] sm:$0xff] }
 0x31e   : > { %2466 = vmatpush3.xpose.msra.mxu1 %v4739_v29  ;;  %2469 = vmatprep.mubr.msk.f32.mxu1 %vm2669_vm1, %v4730_v0 }
 0x31f   : > { %2467 = vmatprep.subr.mxu1 %v4730_v0  ;;  %v903_v21 = vcombine.high %v899_v24, %v899_v24 }
 0x322   : > { %2468 = vmatpush3.xpose.msra.mxu1 %v4740_v15 }
 0x323   : > { %2472 = vmatprep.subr.mxu1 %v4730_v0 }
 0x325   : > { %2470 = vmatmul.mubr.f32.vlgmr.msra.gmra.mxu1 %v885_v18 }
 0x326   : > { %2473 = vmatpush3.xpose.msra.mxu1 %v4741_v17  ;;  %2476 = vmatprep.mubr.msk.f32.mxu1 %vm2669_vm1, %v4730_v0 }
 0x327   : > { %2474 = vmatprep.subr.mxu1 %v4730_v0 }
 0x32a   : > { %2475 = vmatpush3.xpose.msra.mxu1 %v4742_v14 }
 0x32b   : > { %2479 = vmatprep.subr.mxu1 %v4730_v0 }
 0x32d   : > { %2477 = vmatmul.mubr.f32.vlgmr.msra.gmra.mxu1 %v899_v24 }
 0x32e   : > { %2480 = vmatpush3.xpose.msra.mxu1 %v4743_v25  ;;  %2483 = vmatprep.mubr.msk.f32.mxu1 %vm2669_vm1, %v4730_v0 }
 0x32f   : > { %2481 = vmatprep.subr.mxu1 %v4730_v0 }
 0x332   : > { %2482 = vmatpush3.xpose.msra.mxu1 %v4744_v2 }
 0x333   : > { %2486 = vmatprep.subr.mxu1 %v4730_v0 }
 0x335   : > { %2484 = vmatmul.mubr.f32.vlgmr.msra.gmra.mxu1 %v901_v4 }
 0x336   : > { %2487 = vmatpush3.xpose.msra.mxu1 %v4745_v27  ;;  %2490 = vmatprep.mubr.msk.f32.mxu1 %vm2669_vm1, %v4730_v0 }
 0x337   : > { %2488 = vmatprep.subr.mxu1 %v4730_v0 }
 0x33a   : > { %2489 = vmatpush3.xpose.msra.mxu1 %v4746_v22 }
 0x33b   : > { %2500 = vmatprep.subr.mxu1 %v4730_v0 }
 0x33d   : > { %2491 = vmatmul.mubr.f32.vlgmr.msra.gmra.mxu1 %v903_v21 }
 0x33e   : > { %2501 = vmatpush3.msra.mxu1 %v4733_v3  ;;  %2504 = vmatprep.mubr.msk.f32.mxu1 %vm2669_vm1, %v4730_v0 }
 0x33f   : > { %2502 = vmatprep.subr.mxu1 %v4730_v0 }
 0x340   : > { %2503 = vmatpush3.msra.mxu1 %v4734_v30 }
 0x341   : > { %2514 = vmatprep.subr.mxu1 %v4730_v0 }
 0x3c5   : > { %v978_v4 = vpop.f32.mrf.mxu1 }
 0x3c6   : > { %v1472_v5 = vsel %vm586_vm0, %v978_v4, -1e+30 }
 0x3c7   : > { %v2443_v24 = vpop.f32.mrf.mxu1  ;;  %v1481_v6 = vsel %vm1480_vm2, %v1472_v5, -inf }
 0x3c8   : > { %1482 = vmax.xlane.f32.xlu0 %v1481_v6 }
 0x3cd   : > { %v1048_v21 = vpop.f32.mrf.mxu1 }
 0x3ce   : > { %v1473_v3 = vsel %vm586_vm0, %v1048_v21, -1e+30 }
 0x3cf   : > { %v2450_v7 = vpop.f32.mrf.mxu1  ;;  %v1484_v8 = vsel %vm1480_vm2, %v1473_v3, -inf }
 0x3d0   : > { %1485 = vmax.xlane.f32.xlu0 %v1484_v8 }
 0x3d5   : > { %v1118_v9 = vpop.f32.mrf.mxu1 }
 0x3d6   : > { %v1474_v10 = vsel %vm586_vm0, %v1118_v9, -1e+30 }
 0x3d7   : > { %v2457_v11 = vpop.f32.mrf.mxu1  ;;  %v1487_v23 = vsel %vm1480_vm2, %v1474_v10, -inf }
 0x3d8   : > { %1488 = vmax.xlane.f32.xlu1 %v1487_v23 }
 0x3dd   : > { %v1188_v4 = vpop.f32.mrf.mxu1 }
 0x3de   : > { %v1475_v6 = vsel %vm586_vm0, %v1188_v4, -1e+30 }
 0x3df   : > { %v2464_v24 = vpop.f32.mrf.mxu1  ;;  %v1490_v26 = vsel %vm1480_vm2, %v1475_v6, -inf }
 0x3e0   : > { %1491 = vmax.xlane.f32.xlu1 %v1490_v26 }
 0x3e5   : > { %v1258_v7 = vpop.f32.mrf.mxu1 }
 0x3e6   : > { %v1476_v8 = vsel %vm586_vm0, %v1258_v7, -1e+30 }
 0x3e7   : > { %v2471_v21 = vpop.f32.mrf.mxu1  ;;  %v1493_v28 = vsel %vm1480_vm2, %v1476_v8, -inf }
 0x3e8   : > { %1494 = vmax.xlane.f32.xlu0 %v1493_v28 }
 0x3ed   : > { %v1328_v11 = vpop.f32.mrf.mxu1 }
 0x3ee   : > { %v1477_v9 = vsel %vm586_vm0, %v1328_v11, -1e+30 }
 0x3ef   : > { %v2478_v23 = vpop.f32.mrf.mxu1  ;;  %v1496_v30 = vsel %vm1480_vm2, %v1477_v9, -inf }
 0x3f0   : > { %1497 = vmax.xlane.f32.xlu1 %v1496_v30 }
 0x3f5   : > { %v1398_v4 = vpop.f32.mrf.mxu1 }
 0x3f6   : > { %v1478_v26 = vsel %vm586_vm0, %v1398_v4, -1e+30 }
 0x3f7   : > { %v2485_v24 = vpop.f32.mrf.mxu1  ;;  %v1499_v31 = vsel %vm1480_vm2, %v1478_v26, -inf }
 0x3f8   : > { %1500 = vmax.xlane.f32.xlu0 %v1499_v31 }
 0x3fd   : > { %v1468_v7 = vpop.f32.mrf.mxu1 }
 0x3fe   : > { %v1479_v28 = vsel %vm586_vm0, %v1468_v7, -1e+30 }
 0x3ff   : > { %v2492_v21 = vpop.f32.mrf.mxu1  ;;  %v1502_v32 = vsel %vm1480_vm2, %v1479_v28, -inf }
 0x400   : > { %1503 = vmax.xlane.f32.xlu1 %v1502_v32 }
 0x451   : > { %v1483_v11 = vpop.xlane.xlu0 %1482 }
 0x452   : > { %v1505_v23 = vsub.f32 %v1472_v5, %v1483_v11 }
 0x454   : > { %v1513_v33 = vmul.f32 1.442695, %v1505_v23 }
 0x456   : > { %2601 = vpow2.f32 %v1513_v33 }
 0x459   : > { %v1486_v30 = vpop.xlane.xlu0 %1485 }
 0x45a   : > { %v1506_v34 = vsub.f32 %v1473_v3, %v1486_v30 }
 0x45c   : > { %v1515_v35 = vmul.f32 1.442695, %v1506_v34 }
 0x45e   : > { %2603 = vpow2.f32 %v1515_v35 }
 0x461   : > { %v1489_v4 = vpop.xlane.xlu1 %1488 }
 0x462   : > { %v1507_v24 = vsub.f32 %v1474_v10, %v1489_v4 }
 0x463   : > { %v2602_v36 = vpop.eup %2601 }
 0x464   : > { %v1517_v31 = vmul.f32 1.442695, %v1507_v24  ;;  %v1529_v37 = vsel %vm1480_vm2, %v2602_v36, 0.0 }
 0x465   : > { %1530 = vadd.xlane.f32.xlu0 %v1529_v37 }
 0x466   : > { %2605 = vpow2.f32 %v1517_v31 }
 0x469   : > { %v1492_v7 = vpop.xlane.xlu1 %1491 }
 0x46a   : > { %v1508_v21 = vsub.f32 %v1475_v6, %v1492_v7 }
 0x46b   : > { %v2604_v18 = vpop.eup %2603 }
 0x46c   : > { %v1519_v32 = vmul.f32 1.442695, %v1508_v21  ;;  %v1532_v5 = vsel %vm1480_vm2, %v2604_v18, 0.0 }
 0x46d   : > { %1533 = vadd.xlane.f32.xlu1 %v1532_v5 }
 0x46e   : > { %2607 = vpow2.f32 %v1519_v32 }
 0x471   : > { %v1495_v33 = vpop.xlane.xlu0 %1494 }
 0x472   : > { %v1509_v3 = vsub.f32 %v1476_v8, %v1495_v33 }
 0x473   : > { %v2606_v34 = vpop.eup %2605 }
 0x474   : > { %v1521_v35 = vmul.f32 1.442695, %v1509_v3  ;;  %v1535_v10 = vsel %vm1480_vm2, %v2606_v34, 0.0 }
 0x475   : > { %1536 = vadd.xlane.f32.xlu0 %v1535_v10 }
 0x476   : > { %2609 = vpow2.f32 %v1521_v35 }
 0x479   : > { %v1498_v11 = vpop.xlane.xlu1 %1497 }
 0x47a   : > { %v1510_v23 = vsub.f32 %v1477_v9, %v1498_v11 }
 0x47b   : > { %v2608_v37 = vpop.eup %2607 }
 0x47c   : > { %v1523_v30 = vmul.f32 1.442695, %v1510_v23  ;;  %v1538_v6 = vsel %vm1480_vm2, %v2608_v37, 0.0 }
 0x47d   : > { %1539 = vadd.xlane.f32.xlu1 %v1538_v6 }
 0x47e   : > { %2611 = vpow2.f32 %v1523_v30 }
 0x481   : > { %v1501_v4 = vpop.xlane.xlu0 %1500 }
 0x482   : > { %v1511_v24 = vsub.f32 %v1478_v26, %v1501_v4 }
 0x483   : > { %v4287_v31 = vpop.eup %2609 }
 0x484   : > { %v1525_v7 = vmul.f32 1.442695, %v1511_v24  ;;  %v1541_v8 = vsel %vm1480_vm2, %v4287_v31, 0.0 }
 0x485   : > { %1542 = vadd.xlane.f32.xlu0 %v1541_v8 }
 0x486   : > { %2613 = vpow2.f32 %v1525_v7 }
 0x489   : > { %v1504_v21 = vpop.xlane.xlu1 %1503 }
 0x48a   : > { %v1512_v32 = vsub.f32 %v1479_v28, %v1504_v21 }
 0x48b   : > { %v4291_v5 = vpop.eup %2611 }
 0x48c   : > { %v1527_v9 = vmul.f32 1.442695, %v1512_v32  ;;  %v1544_v33 = vsel %vm1480_vm2, %v4291_v5, 0.0 }
 0x48d   : > { %1545 = vadd.xlane.f32.xlu1 %v1544_v33 }
 0x48e   : > { %2615 = vpow2.f32 %v1527_v9 }
 0x493   : > { %v4295_v3 = vpop.eup %2613 }
 0x494   : > { %v1547_v26 = vsel %vm1480_vm2, %v4295_v3, 0.0 }
 0x495   : > { %1548 = vadd.xlane.f32.xlu0 %v1547_v26 }
 0x49b   : > { %v4299_v35 = vpop.eup %2615 }
 0x49c   : > { %v1550_v10 = vsel %vm1480_vm2, %v4299_v35, 0.0 }
 0x49d   : > { %1551 = vadd.xlane.f32.xlu1 %v1550_v10 }
 0x4ee   : > { %v1531_v28 = vpop.xlane.xlu0 %1530 }
 0x4ef   : > { %2617 = vrcp.f32 %v1531_v28 }
 0x4f6   : > { %v1534_v11 = vpop.xlane.xlu1 %1533 }
 0x4f7   : > { %2619 = vrcp.f32 %v1534_v11 }
 0x4fc   : > { %v2618_v23 = vpop.eup %2617 }
 0x4fd   : > { %v1561_v30 = vmul.f32 %v2618_v23, %v2602_v36 }
 0x4fe   : > { %v1537_v6 = vpop.xlane.xlu0 %1536 }
 0x4ff   : > { %2621 = vrcp.f32 %v1537_v6  ;;  %2498 = vmatmul.mubr.msk.f32.vlgmr.msra.gmra.mxu0 %vm1569_vm3, %v1561_v30  ;;  %v4749_v30 = vld [vmem:[#allocation138_spill] sm:$0xff]  ;;  %v4751_v6 = vld [vmem:[#allocation137_spill] sm:$0xff] }
 0x500   : > { %2508 = vmatpush3.msra.mxu0 %v4735_v16  ;;  %2511 = vmatprep.mubr.msk.f32.mxu0 %vm2669_vm1, %v4730_v0 }
 0x501   : > { %2509 = vmatprep.subr.mxu0 %v4730_v0 }
 0x502   : > { %2510 = vmatpush3.msra.mxu0 %v4736_v1 }
 0x503   : > { %2521 = vmatprep.subr.mxu0 %v4730_v0 }
 0x504   : > { %v2620_v4 = vpop.eup %2619 }
 0x505   : > { %v1562_v24 = vmul.f32 %v2620_v4, %v2604_v18  ;;  %v4752_v4 = vld [vmem:[#allocation152_spill] sm:$0xff] }
 0x506   : > { %v1540_v7 = vpop.xlane.xlu1 %1539 }
 0x507   : > { %2623 = vrcp.f32 %v1540_v7  ;;  %2505 = vmatmul.mubr.msk.f32.vlgmr.msra.gmra.mxu1 %vm1569_vm3, %v1562_v24  ;;  %v4753_v7 = vld [vmem:[#allocation136_spill] sm:$0xff] }
 0x508   : > { %2515 = vmatpush3.msra.mxu1 %v4737_v19  ;;  %2518 = vmatprep.mubr.msk.f32.mxu1 %vm2669_vm1, %v4730_v0 }
 0x509   : > { %2516 = vmatprep.subr.mxu1 %v4730_v0 }
 0x50a   : > { %2517 = vmatpush3.msra.mxu1 %v4738_v20 }
 0x50b   : > { %2528 = vmatprep.subr.mxu1 %v4730_v0 }
 0x50c   : > { %v2622_v36 = vpop.eup %2621 }
 0x50d   : > { %v1563_v8 = vmul.f32 %v2622_v36, %v2606_v34  ;;  %v4754_v36 = vld [vmem:[#allocation151_spill] sm:$0xff] }
 0x50e   : > { %v1543_v21 = vpop.xlane.xlu0 %1542 }
 0x50f   : > { %2625 = vrcp.f32 %v1543_v21  ;;  %2512 = vmatmul.mubr.msk.f32.vlgmr.msra.gmra.mxu0 %vm1569_vm3, %v1563_v8  ;;  %v4755_v8 = vld [vmem:[#allocation135_spill] sm:$0xff]  ;;  %v4757_v21 = vld [vmem:[#allocation134_spill] sm:$0xff] }
 0x510   : > { %2522 = vmatpush3.msra.mxu0 %v4739_v29  ;;  %2525 = vmatprep.mubr.msk.f32.mxu0 %vm2669_vm1, %v4730_v0 }
 0x511   : > { %2523 = vmatprep.subr.mxu0 %v4730_v0 }
 0x512   : > { %2524 = vmatpush3.msra.mxu0 %v4740_v15 }
 0x513   : > { %2535 = vmatprep.subr.mxu0 %v4730_v0 }
 0x514   : > { %v2624_v18 = vpop.eup %2623 }
 0x515   : > { %v1564_v32 = vmul.f32 %v2624_v18, %v2608_v37  ;;  %v4748_v37 = vld [vmem:[#allocation154_spill] sm:$0xff]  ;;  %v4758_v18 = vld [vmem:[#allocation149_spill] sm:$0xff] }
 0x516   : > { %v1546_v9 = vpop.xlane.xlu1 %1545 }
 0x517   : > { %2627 = vrcp.f32 %v1546_v9  ;;  %2519 = vmatmul.mubr.msk.f32.vlgmr.msra.gmra.mxu1 %vm1569_vm3, %v1564_v32  ;;  %v4759_v32 = vld [vmem:[#allocation133_spill] sm:$0xff]  ;;  %v4760_v9 = vld [vmem:[#allocation148_spill] sm:$0xff] }
 0x518   : > { %2529 = vmatpush3.msra.mxu1 %v4741_v17  ;;  %2532 = vmatprep.mubr.msk.f32.mxu1 %vm2669_vm1, %v4730_v0 }
 0x519   : > { %2530 = vmatprep.subr.mxu1 %v4730_v0 }
 0x51a   : > { %2531 = vmatpush3.msra.mxu1 %v4742_v14 }
 0x51b   : > { %2542 = vmatprep.subr.mxu1 %v4730_v0 }
 0x51c   : > { %v2626_v34 = vpop.eup %2625 }
 0x51d   : > { %v1565_v33 = vmul.f32 %v2626_v34, %v4287_v31  ;;  %v4761_v34 = vld [vmem:[#allocation132_spill] sm:$0xff] }
 0x51e   : > { %v1549_v26 = vpop.xlane.xlu0 %1548 }
 0x51f   : > { %2629 = vrcp.f32 %v1549_v26  ;;  %2526 = vmatmul.mubr.msk.f32.vlgmr.msra.gmra.mxu0 %vm1569_vm3, %v1565_v33  ;;  %v4762_v33 = vld [vmem:[#allocation147_spill] sm:$0xff]  ;;  %v4764_v26 = vld [vmem:[#allocation146_spill] sm:$0xff] }
 0x520   : > { %2536 = vmatpush3.msra.mxu0 %v4743_v25  ;;  %2539 = vmatprep.mubr.msk.f32.mxu0 %vm2669_vm1, %v4730_v0 }
 0x521   : > { %2537 = vmatprep.subr.mxu0 %v4730_v0 }
 0x522   : > { %2538 = vmatpush3.msra.mxu0 %v4744_v2 }
 0x523   : > { %2367 = vmatprep.subr.mxu0 %v4748_v37  ;;  %v4765_v37 = vld [vmem:[#allocation130_spill] sm:$0xff] }
 0x524   : > { %v2628_v10 = vpop.eup %2627 }
 0x525   : > { %v1566_v28 = vmul.f32 %v2628_v10, %v4291_v5  ;;  %v4750_v5 = vld [vmem:[#allocation153_spill] sm:$0xff] }
 0x526   : > { %v1552_v11 = vpop.xlane.xlu1 %1551  ;;  %v4766_v10 = vld [vmem:[#allocation145_spill] sm:$0xff] }
 0x527   : > { %2631 = vrcp.f32 %v1552_v11  ;;  %2533 = vmatmul.mubr.msk.f32.vlgmr.msra.gmra.mxu1 %vm1569_vm3, %v1566_v28  ;;  %v4767_v28 = vld [vmem:[#allocation129_spill] sm:$0xff]  ;;  %v4768_v11 = vld [vmem:[#allocation144_spill] sm:$0xff] }
 0x528   : > { %2543 = vmatpush3.msra.mxu1 %v4745_v27  ;;  %2546 = vmatprep.mubr.msk.f32.mxu1 %vm2669_vm1, %v4730_v0 }
 0x529   : > { %2544 = vmatprep.subr.mxu1 %v4730_v0 }
 0x52a   : > { %2545 = vmatpush3.msra.mxu1 %v4746_v22 }
 0x52c   : > { %v2630_v31 = vpop.eup %2629 }
 0x52d   : > { %v1567_v23 = vmul.f32 %v2630_v31, %v4295_v3  ;;  %v4756_v3 = vld [vmem:[#allocation150_spill] sm:$0xff]  ;;  %v4769_v31 = vld [vmem:[#allocation128_spill] sm:$0xff] }
 0x52f   : > { %2540 = vmatmul.mubr.msk.f32.vlgmr.msra.gmra.mxu0 %vm1569_vm3, %v1567_v23  ;;  %v4770_v23 = vld [vmem:[#allocation143_spill] sm:$0xff] }
 0x530   : > { %2368 = vmatpush3.msra.mxu0 %v4749_v30  ;;  %v4771_v30 = vld [vmem:[#allocation127_spill] sm:$0xff] }
 0x531   : > { %2369 = vmatprep.subr.mxu0 %v4750_v5  ;;  %v4772_v5 = vld [vmem:[#allocation142_spill] sm:$0xff] }
 0x532   : > { %2370 = vmatpush3.msra.mxu0 %v4751_v6  ;;  %v4773_v6 = vld [vmem:[#allocation126_spill] sm:$0xff] }
 0x533   : > { %2371 = vmatprep.subr.mxu0 %v4752_v4  ;;  %v4774_v4 = vld [vmem:[#allocation141_spill] sm:$0xff] }
 0x534   : > { %v2632_v24 = vpop.eup %2631  ;;  %2372 = vmatpush3.msra.mxu0 %v4753_v7  ;;  %v4776_v7 = vld [vmem:[#allocation140_spill] sm:$0xff] }
 0x535   : > { %v1568_v0 = vmul.f32 %v2632_v24, %v4299_v35  ;;  %2373 = vmatprep.subr.mxu0 %v4754_v36  ;;  %v4763_v35 = vld [vmem:[#allocation131_spill] sm:$0xff]  ;;  %v4775_v24 = vld [vmem:[#allocation125_spill] sm:$0xff] }
 0x536   : > { %2374 = vmatpush3.msra.mxu0 %v4755_v8  ;;  %v4778_v36 = vld [vmem:[#allocation139_spill] sm:$0xff] }
 0x537   : > { %2547 = vmatmul.mubr.msk.f32.vlgmr.msra.gmra.mxu1 %vm1569_vm3, %v1568_v0  ;;  %2375 = vmatprep.subr.mxu0 %v4756_v3  ;;  %v4777_v0 = vld [vmem:[#allocation124_spill] sm:$0xff]  ;;  %v4779_v8 = vld [vmem:[#allocation123_spill] sm:$0xff] }
 0x538   : > { %2376 = vmatpush3.msra.mxu0 %v4757_v21 }
 0x539   : > { %2377 = vmatprep.subr.mxu0 %v4758_v18 }
 0x53a   : > { %2378 = vmatpush3.msra.mxu0 %v4759_v32 }
 0x53b   : > { %2379 = vmatprep.subr.mxu0 %v4760_v9 }
 0x53c   : > { %2380 = vmatpush3.msra.mxu0 %v4761_v34 }
 0x53d   : > { %2381 = vmatprep.subr.mxu0 %v4762_v33 }
 0x53e   : > { %2382 = vmatpush3.msra.mxu0 %v4763_v35 }
 0x53f   : > { %2383 = vmatprep.subr.mxu0 %v4764_v26 }
 0x540   : > { %2384 = vmatpush3.msra.mxu0 %v4765_v37 }
 0x541   : > { %2385 = vmatprep.subr.mxu0 %v4766_v10 }
 0x542   : > { %2386 = vmatpush3.msra.mxu0 %v4767_v28 }
 0x543   : > { %2387 = vmatprep.subr.mxu0 %v4768_v11 }
 0x544   : > { %2388 = vmatpush3.msra.mxu0 %v4769_v31 }
 0x545   : > { %2389 = vmatprep.subr.mxu0 %v4770_v23 }
 0x546   : > { %2390 = vmatpush3.msra.mxu0 %v4771_v30 }
 0x547   : > { %2391 = vmatprep.subr.mxu0 %v4772_v5 }
 0x548   : > { %2392 = vmatpush3.msra.mxu0 %v4773_v6 }
 0x549   : > { %2393 = vmatprep.subr.mxu0 %v4774_v4 }
 0x54a   : > { %2394 = vmatpush3.msra.mxu0 %v4775_v24 }
 0x54b   : > { %2395 = vmatprep.subr.mxu0 %v4776_v7 }
 0x54c   : > { %2396 = vmatpush3.msra.mxu0 %v4777_v0 }
 0x54d   : > { %2397 = vmatprep.subr.mxu0 %v4778_v36 }
 0x54e   : > { %2398 = vmatpush3.msra.mxu0 %v4779_v8 }
 0x5bf   : > { %v1639_v3 = vpop.f32.mrf.mxu0 }
 0x5c1   : > { %v2499_v21 = vpop.f32.mrf.mxu0 }
 0x5c7   : > { %v1712_v18 = vpop.f32.mrf.mxu1 }
 0x5c8   : > { %v2162_v31 = vrot.slane %v1712_v18, 7 }
 0x5c9   : > { %v2506_v32 = vpop.f32.mrf.mxu1 }
 0x5ca   : > { %v2164_v4 = vsel %vm2163_vm4, %v2162_v31, %v1639_v3 }
 0x5cf   : > { %v1785_v9 = vpop.f32.mrf.mxu0 }
 0x5d0   : > { %v2165_v23 = vrot.slane %v1785_v9, 6 }
 0x5d1   : > { %v2513_v34 = vpop.f32.mrf.mxu0 }
 0x5d2   : > { %v2167_v7 = vsel %vm2166_vm5, %v2165_v23, %v2164_v4 }
 0x5d7   : > { %v1858_v33 = vpop.f32.mrf.mxu1 }
 0x5d8   : > { %v2168_v5 = vrot.slane %v1858_v33, 5 }
 0x5d9   : > { %v2520_v35 = vpop.f32.mrf.mxu1 }
 0x5da   : > { %v2170_v36 = vsel %vm2169_vm6, %v2168_v5, %v2167_v7 }
 0x5df   : > { %v1931_v26 = vpop.f32.mrf.mxu0 }
 0x5e0   : > { %v2171_v6 = vrot.slane %v1931_v26, 4 }
 0x5e1   : > { %v2527_v37 = vpop.f32.mrf.mxu0 }
 0x5e2   : > { %v2173_v8 = vsel %vm2172_vm7, %v2171_v6, %v2170_v36  ;;  %v4780_v37 = vld [vmem:[#allocation155_spill] sm:$0xff] }
 0x5e7   : > { %v2004_v10 = vpop.f32.mrf.mxu1 }
 0x5e8   : > { %v2174_v24 = vrot.slane %v2004_v10, 3 }
 0x5e9   : > { %v2534_v28 = vpop.f32.mrf.mxu1 }
 0x5ea   : > { %v2176_v18 = vsel %vm2175_vm8, %v2174_v24, %v2173_v8 }
 0x5ef   : > { %v2077_v11 = vpop.f32.mrf.mxu0 }
 0x5f0   : > { %v2177_v0 = vrot.slane %v2077_v11, 2 }
 0x5f1   : > { %v2541_v30 = vpop.f32.mrf.mxu0 }
 0x5f2   : > { %v2179_v34 = vsel %vm2178_vm9, %v2177_v0, %v2176_v18 }
 0x5f7   : > { %v2150_v21 = vpop.f32.mrf.mxu1 }
 0x5f8   : > { %v2180_v32 = vrot.slane %v2150_v21, 1 }
 0x5f9   : > { %v2548_v9 = vpop.f32.mrf.mxu1 }
 0x5fa   : > { %v2182_v35 = vsel %vm2181_vm10, %v2180_v32, %v2179_v34 }
 0x5fb   : > { %2254 = vmatprep.mubr.f32.mxu0 %v2182_v35 }
 0x5fc   : > { %2255 = vmatmul.mubr.f32.vlgmr.msra.gmra.mxu0 %v4200_v13 }
 0x6bc   : > { %v2399_v3 = vpop.f32.mrf.mxu0 }
 0x6be   : > { %v2400_v33 = vpop.f32.mrf.mxu0 }
 0x6bf   : > { %v2401_v26 = vadd.f32 %v2400_v33, %v2399_v3 }
 0x6c1   : > { %v2257_v10 = vadd.f32 %v2401_v26, %v4780_v37 }
 0x6c3   : > { %2633 = vtanh.f32 %v2257_v10 }
 0x6cd   :  { %593 = sbr.rel (!%p591_p0) target bundleno = 260 (0x104), region = 73 }
 0x6d0   : > { %v2634_v21 = vpop.eup %2633  }
 0x6d1   : > { %2262 = vst [vmem:[%s2261_s27] sm:$0xff] %v2634_v21 }

</bundles_post_ra>
